<compile_context>
chip_gen: v7x
topology: tpu7x:2x2x1
jax: 0.10.0
libtpu: 0.0.40
codegen_flags: <defaults>
</compile_context>

<pallas_src>
import math

import jax
import jax.numpy as jnp
from jax.experimental import pallas as pl
from jax.experimental.pallas import tpu as pltpu

# ----------------------------- config (small) -------------------------------
B = 2            # batch
S = 8            # sequence length
H = 32           # PLM hidden size
NH = 2           # attention heads
DH = H // NH     # head dim
FFN = 64         # intermediate size
LAYERS = 2       # transformer layers
VOCAB = 64
TYPE_VOCAB = 2
MAX_POS = 16
NUM_CLASSES = 8  # relation_class_num

_BS = B * S
_SCALE = 1.0 / math.sqrt(DH)

# global-slab row offsets (embedding tables + emb LN + folded head weights)
_ROW_POS = VOCAB                       # 64
_ROW_TYPE = _ROW_POS + MAX_POS         # 80
_ROW_ELN_G = _ROW_TYPE + TYPE_VOCAB    # 82
_ROW_ELN_B = _ROW_ELN_G + 1            # 83
_ROW_HEAD = _ROW_ELN_B + 1             # 84
_ROW_BCOMB = _ROW_HEAD + 3 * H         # 180
_G_ROWS = 184                          # padded to a multiple of 8

_VMEM = pl.BlockSpec(memory_space=pltpu.MemorySpace.VMEM)
_SMEM = pl.BlockSpec(memory_space=pltpu.MemorySpace.SMEM)


# ------------------------------ fused kernel ---------------------------------
def _layernorm(x, g, b):
    mu = jnp.mean(x, axis=-1, keepdims=True)
    var = jnp.mean(jnp.square(x - mu), axis=-1, keepdims=True)
    return (x - mu) * jax.lax.rsqrt(var + 1e-12) * g + b


def _fused_forward_kernel(scalars_ref, misc_ref, g_ref, w_ref, b_ref,
                          logits_ref, loss_ref, xbuf, selbuf):
    # scalars_ref (SMEM int32 [2*B*S + 3*B]):
    #   [0:BS]        flattened input_ids
    #   [BS:2BS]      flattened token_type_ids
    #   [2BS:2BS+3B]  flat row indices of the special tokens (1, 4, 5 groups)
    # misc_ref (VMEM f32 [B, S + C]): cols 0:S attention_mask, cols S:S+C labels one-hot

    # ---- embeddings: word/pos/type row lookups from the VMEM-resident table ----
    for i in range(_BS):
        tok = scalars_ref[i]
        tt = scalars_ref[_BS + i]
        pos_row = _ROW_POS + (i % S)                         # static
        row = (g_ref[pl.ds(tok, 1), :]
               + g_ref[pos_row:pos_row + 1, :]
               + g_ref[pl.ds(_ROW_TYPE + tt, 1), :])
        xbuf[i:i + 1, :] = row
    x = _layernorm(xbuf[...],
                   g_ref[_ROW_ELN_G:_ROW_ELN_G + 1, :],
                   g_ref[_ROW_ELN_B:_ROW_ELN_B + 1, :])      # [B*S, H]

    # additive attention mask built in-kernel: 0 where attended, -1e9 where not
    addmask = (1.0 - misc_ref[:, 0:S]) * -1e9                # [B, S]

    # ---- transformer layers (static unroll; all weights resident in VMEM) ----
    for l in range(LAYERS):
        # carve the per-layer slabs with static slices
        wqkv = w_ref[l, 0:H, :]                              # [H, 2H + NH*H] = [32,128]
        w1 = w_ref[l, H:2 * H, 0:FFN]                        # [32, 64]
        w2 = w_ref[l, 2 * H:2 * H + FFN, 0:H]                # [64, 32]
        bqkv = b_ref[l, 0:1, :]                              # [1, 128]
        bo = b_ref[l, 1:2, 0:H]
        ln1_g = b_ref[l, 2:3, 0:H]
        ln1_b = b_ref[l, 3:4, 0:H]
        b1 = b_ref[l, 4:5, 0:FFN]
        b2 = b_ref[l, 5:6, 0:H]
        ln2_g = b_ref[l, 6:7, 0:H]
        ln2_b = b_ref[l, 7:8, 0:H]

        # fused Q / K / (V folded with the per-head output projection):
        # lane-dense [B*S, 128] result of a single MXU dot.
        proj = jnp.dot(x, wqkv, preferred_element_type=jnp.float32) + bqkv

        ctx = None
        for h in range(NH):
            q = proj[:, h * DH:(h + 1) * DH].reshape(B, S, DH)
            k = proj[:, H + h * DH:H + (h + 1) * DH].reshape(B, S, DH)
            vo = proj[:, 2 * H + h * H:2 * H + (h + 1) * H].reshape(B, S, H)
            s = (jnp.einsum('bqd,bkd->bqk', q, k,
                            preferred_element_type=jnp.float32) * _SCALE
                 + addmask[:, None, :])                      # [B, S, S]
            s = s - jnp.max(s, axis=-1, keepdims=True)
            p = jnp.exp(s)
            p = p / jnp.sum(p, axis=-1, keepdims=True)
            pv = jnp.einsum('bqk,bkd->bqd', p, vo,
                            preferred_element_type=jnp.float32)  # [B, S, H]
            ctx = pv if ctx is None else ctx + pv

        attn = ctx.reshape(_BS, H) + bo
        x = _layernorm(attn + x, ln1_g, ln1_b)

        ff = jnp.dot(x, w1, preferred_element_type=jnp.float32) + b1
        # TODO(synk): HF BertIntermediate default is exact erf GELU; tanh
        # approximation used here (EUP-friendly, small numeric drift).
        ff = jax.nn.gelu(ff, approximate=True)
        ff = jnp.dot(ff, w2, preferred_element_type=jnp.float32) + b2
        x = _layernorm(ff + x, ln2_g, ln2_b)

    # ---- special-token row gather via SMEM indices (no one-hot matmul) ----
    xbuf[...] = x
    for j in range(3 * B):
        idx = scalars_ref[2 * _BS + j]
        selbuf[j:j + 1, :] = xbuf[pl.ds(idx, 1), :]
    sel = selbuf[...]                                        # [3B, H]

    # ---- folded (fc0/fc1/fc2 + classifier) affine head: 3 tiny dots + bias ----
    w0f = g_ref[_ROW_HEAD + 0 * H:_ROW_HEAD + 1 * H, 0:NUM_CLASSES]
    w1f = g_ref[_ROW_HEAD + 1 * H:_ROW_HEAD + 2 * H, 0:NUM_CLASSES]
    w2f = g_ref[_ROW_HEAD + 2 * H:_ROW_HEAD + 3 * H, 0:NUM_CLASSES]
    bc = g_ref[_ROW_BCOMB:_ROW_BCOMB + 1, 0:NUM_CLASSES]
    logits = (jnp.dot(sel[0:B], w0f, preferred_element_type=jnp.float32)
              + jnp.dot(sel[B:2 * B], w1f, preferred_element_type=jnp.float32)
              + jnp.dot(sel[2 * B:3 * B], w2f, preferred_element_type=jnp.float32)
              + bc)                                          # [B, C]
    logits_ref[...] = logits

    # ---- mean cross-entropy (CrossEntropyLoss, weight=None) ----
    onehot = misc_ref[:, S:S + NUM_CLASSES]                  # [B, C]
    m = jnp.max(logits, axis=-1, keepdims=True)
    lse = jnp.log(jnp.sum(jnp.exp(logits - m), axis=-1, keepdims=True)) + m
    nll = lse - jnp.sum(onehot * logits, axis=-1, keepdims=True)   # [B, 1]
    loss_ref[...] = jnp.mean(nll, keepdims=True)             # [1, 1]


# ------------------------------ parameter init -------------------------------
def init_params(key):
    keys = iter(jax.random.split(key, 40))

    def dense(kin, kout):
        kw, kb = jax.random.split(next(keys))
        return (jax.random.normal(kw, (kin, kout), jnp.float32) * 0.02,
                jax.random.normal(kb, (1, kout), jnp.float32) * 0.02)

    p = {
        "word_emb": jax.random.normal(next(keys), (VOCAB, H), jnp.float32) * 0.02,
        "pos_emb": jax.random.normal(next(keys), (MAX_POS, H), jnp.float32) * 0.02,
        "type_emb": jax.random.normal(next(keys), (TYPE_VOCAB, H), jnp.float32) * 0.02,
        "emb_ln_g": jnp.ones((1, H), jnp.float32),
        "emb_ln_b": jnp.zeros((1, H), jnp.float32),
    }
    layers = []
    for _ in range(LAYERS):
        lyr = {}
        lyr["wq"], lyr["bq"] = dense(H, H)
        lyr["wk"], lyr["bk"] = dense(H, H)
        lyr["wv"], lyr["bv"] = dense(H, H)
        lyr["wo"], lyr["bo"] = dense(H, H)
        lyr["ln1_g"], lyr["ln1_b"] = (jnp.ones((1, H), jnp.float32),
                                      jnp.zeros((1, H), jnp.float32))
        lyr["w1"], lyr["b1"] = dense(H, FFN)
        lyr["w2"], lyr["b2"] = dense(FFN, H)
        lyr["ln2_g"], lyr["ln2_b"] = (jnp.ones((1, H), jnp.float32),
                                      jnp.zeros((1, H), jnp.float32))
        layers.append(lyr)
    p["layers"] = layers
    p["fc0_w"], p["fc0_b"] = dense(H, H)
    p["fc1_w"], p["fc1_b"] = dense(H, H)
    p["fc2_w"], p["fc2_b"] = dense(H, H)
    p["cls_w"], p["cls_b"] = dense(3 * H, NUM_CLASSES)
    return p


# ---------------- one-time wrapper-side weight packing / folding -------------
def pack_params(p):
    def pad_cols(a, n):
        return jnp.pad(a, ((0, 0), (0, n - a.shape[1])))

    wslab, bslab = [], []
    for lyr in p["layers"]:
        # fold V and output projection per head: wvo_h = wv_h @ wo_h (affine, exact)
        wvo, bvo = [], []
        for h in range(NH):
            wo_h = lyr["wo"][h * DH:(h + 1) * DH, :]          # [DH, H]
            wvo.append(lyr["wv"][:, h * DH:(h + 1) * DH] @ wo_h)   # [H, H]
            bvo.append(lyr["bv"][:, h * DH:(h + 1) * DH] @ wo_h)   # [1, H]
        wqkvo = jnp.concatenate([lyr["wq"], lyr["wk"]] + wvo, axis=1)   # [H, 128]
        bqkvo = jnp.concatenate([lyr["bq"], lyr["bk"]] + bvo, axis=1)   # [1, 128]
        wslab.append(jnp.concatenate(
            [wqkvo, pad_cols(lyr["w1"], 128), pad_cols(lyr["w2"], 128)], axis=0))
        bslab.append(jnp.concatenate(
            [bqkvo,
             pad_cols(lyr["bo"], 128),
             pad_cols(lyr["ln1_g"], 128), pad_cols(lyr["ln1_b"], 128),
             pad_cols(lyr["b1"], 128), pad_cols(lyr["b2"], 128),
             pad_cols(lyr["ln2_g"], 128), pad_cols(lyr["ln2_b"], 128)], axis=0))
    wslab = jnp.stack(wslab)                                  # [LAYERS, 128, 128]
    bslab = jnp.stack(bslab)                                  # [LAYERS,   8, 128]

    # fold fc0/fc1/fc2 + classifier (no nonlinearity between them; Dropout = id)
    cw = p["cls_w"]
    w0f = p["fc0_w"] @ cw[0:H]
    w1f = p["fc1_w"] @ cw[H:2 * H]
    w2f = p["fc2_w"] @ cw[2 * H:3 * H]
    b_comb = (p["fc0_b"] @ cw[0:H] + p["fc1_b"] @ cw[H:2 * H]
              + p["fc2_b"] @ cw[2 * H:3 * H] + p["cls_b"])    # [1, C]

    gslab = jnp.concatenate([
        p["word_emb"], p["pos_emb"], p["type_emb"],
        p["emb_ln_g"], p["emb_ln_b"],
        pad_cols(w0f, H), pad_cols(w1f, H), pad_cols(w2f, H),
        pad_cols(b_comb, H),
        jnp.zeros((_G_ROWS - _ROW_BCOMB - 1, H), jnp.float32)], axis=0)
    assert gslab.shape == (_G_ROWS, H)
    return {"gslab": gslab, "wslab": wslab, "bslab": bslab}


# ------------------------------ model forward --------------------------------
@jax.jit
def re_bert_forward(packed, input_ids, special_mask, token_type_ids,
                    attention_mask, labels_id):
    b, s = input_ids.shape
    base = (jnp.arange(b) * s).astype(jnp.int32)
    # One special token of each kind (1 / 4 / 5) per example (argmax: no sort/scan;
    # if a kind is missing, position 0 is used — same caveat as the reference).
    sel_idx = jnp.concatenate([
        jnp.argmax(special_mask == 1, axis=1).astype(jnp.int32) + base,
        jnp.argmax(special_mask == 4, axis=1).astype(jnp.int32) + base,
        jnp.argmax(special_mask == 5, axis=1).astype(jnp.int32) + base])
    scalars = jnp.concatenate([input_ids.reshape(-1).astype(jnp.int32),
                               token_type_ids.reshape(-1).astype(jnp.int32),
                               sel_idx])                       # [2*B*S + 3*B]
    misc = jnp.concatenate(
        [attention_mask.astype(jnp.float32),
         jax.nn.one_hot(labels_id, NUM_CLASSES, dtype=jnp.float32)], axis=1)

    logits, loss = pl.pallas_call(
        _fused_forward_kernel,
        out_shape=(jax.ShapeDtypeStruct((b, NUM_CLASSES), jnp.float32),
                   jax.ShapeDtypeStruct((1, 1), jnp.float32)),
        in_specs=[_SMEM, _VMEM, _VMEM, _VMEM, _VMEM],
        out_specs=(_VMEM, _VMEM),
        scratch_shapes=[pltpu.VMEM((b * s, H), jnp.float32),
                        pltpu.VMEM((3 * b, H), jnp.float32)],
    )(scalars, misc, packed["gslab"], packed["wslab"], packed["bslab"])
    return loss[0, 0], logits


# ----------------------------------- main ------------------------------------
if __name__ == "__main__":
    key = jax.random.PRNGKey(0)
    kp, kid, klab = jax.random.split(key, 3)

    params = init_params(kp)
    packed = pack_params(params)     # one-time packing / affine folding

    input_ids = jax.random.randint(kid, (B, S), 0, VOCAB, dtype=jnp.int32)
    token_type_ids = jnp.zeros((B, S), jnp.int32)
    attention_mask = jnp.ones((B, S), jnp.int32)
    # Each example: position 0 -> 1 (CLS), position 2 -> 4, position 5 -> 5.
    special_mask = jnp.zeros((B, S), jnp.int32)
    special_mask = special_mask.at[:, 0].set(1)
    special_mask = special_mask.at[:, 2].set(4)
    special_mask = special_mask.at[:, 5].set(5)
    labels_id = jax.random.randint(klab, (B,), 0, NUM_CLASSES, dtype=jnp.int32)

    loss, logits = re_bert_forward(packed, input_ids, special_mask,
                                   token_type_ids, attention_mask, labels_id)
    jax.block_until_ready((loss, logits))
    assert logits.shape == (B, NUM_CLASSES)
    assert bool(jnp.isfinite(loss))
    print("KERNEL_OK")
</pallas_src>

<mosaic_0001>
module attributes {stable_mosaic.version = 11 : i64} {
  func.func @_fused_forward_kernel(%arg0: memref<38xi32, #tpu.memory_space<smem>>, %arg1: memref<2x16xf32, #tpu.memory_space<vmem>>, %arg2: memref<184x32xf32, #tpu.memory_space<vmem>>, %arg3: memref<2x128x128xf32, #tpu.memory_space<vmem>>, %arg4: memref<2x8x128xf32, #tpu.memory_space<vmem>>, %arg5: memref<2x8xf32, #tpu.memory_space<vmem>>, %arg6: memref<1x1xf32, #tpu.memory_space<vmem>>, %arg7: memref<16x32xf32, #tpu.memory_space<vmem>>, %arg8: memref<6x32xf32, #tpu.memory_space<vmem>>) attributes {dimension_semantics = [], scalar_prefetch = 0 : i64, scratch_operands = 2 : i64, tpu.core_type = #tpu.core_type<tc>} {
    %c0 = arith.constant 0 : index
    %0 = memref.load %arg0[%c0] : memref<38xi32, #tpu.memory_space<smem>>
    %c16 = arith.constant 16 : index
    %1 = memref.load %arg0[%c16] : memref<38xi32, #tpu.memory_space<smem>>
    %2 = arith.index_cast %0 : i32 to index
    %c0_0 = arith.constant 0 : index
    %3 = vector.load %arg2[%2, %c0_0] : memref<184x32xf32, #tpu.memory_space<vmem>>, vector<1x32xf32>
    %c64 = arith.constant 64 : index
    %c0_1 = arith.constant 0 : index
    %4 = vector.load %arg2[%c64, %c0_1] : memref<184x32xf32, #tpu.memory_space<vmem>>, vector<1x32xf32>
    %5 = arith.addf %3, %4 : vector<1x32xf32>
    %c80_i32 = arith.constant 80 : i32
    %6 = arith.addi %c80_i32, %1 : i32
    %7 = arith.index_cast %6 : i32 to index
    %c0_2 = arith.constant 0 : index
    %8 = vector.load %arg2[%7, %c0_2] : memref<184x32xf32, #tpu.memory_space<vmem>>, vector<1x32xf32>
    %9 = arith.addf %5, %8 : vector<1x32xf32>
    %c0_3 = arith.constant 0 : index
    %c0_4 = arith.constant 0 : index
    %10 = vector.load %arg7[%c0_3, %c0_4] : memref<16x32xf32, #tpu.memory_space<vmem>>, vector<1x32xf32>
    tpu.vector_store %arg7[%c0_3, %c0_4], %9 {strides = array<i32>} : memref<16x32xf32, #tpu.memory_space<vmem>>, vector<1x32xf32>,
    %c1 = arith.constant 1 : index
    %11 = memref.load %arg0[%c1] : memref<38xi32, #tpu.memory_space<smem>>
    %c17 = arith.constant 17 : index
    %12 = memref.load %arg0[%c17] : memref<38xi32, #tpu.memory_space<smem>>
    %13 = arith.index_cast %11 : i32 to index
    %c0_5 = arith.constant 0 : index
    %14 = vector.load %arg2[%13, %c0_5] : memref<184x32xf32, #tpu.memory_space<vmem>>, vector<1x32xf32>
    %c65 = arith.constant 65 : index
    %c0_6 = arith.constant 0 : index
    %15 = vector.load %arg2[%c65, %c0_6] : memref<184x32xf32, #tpu.memory_space<vmem>>, vector<1x32xf32>
    %16 = arith.addf %14, %15 : vector<1x32xf32>
    %c80_i32_7 = arith.constant 80 : i32
    %17 = arith.addi %c80_i32_7, %12 : i32
    %18 = arith.index_cast %17 : i32 to index
    %c0_8 = arith.constant 0 : index
    %19 = vector.load %arg2[%18, %c0_8] : memref<184x32xf32, #tpu.memory_space<vmem>>, vector<1x32xf32>
    %20 = arith.addf %16, %19 : vector<1x32xf32>
    %c1_9 = arith.constant 1 : index
    %c0_10 = arith.constant 0 : index
    %21 = vector.load %arg7[%c1_9, %c0_10] : memref<16x32xf32, #tpu.memory_space<vmem>>, vector<1x32xf32>
    tpu.vector_store %arg7[%c1_9, %c0_10], %20 {strides = array<i32>} : memref<16x32xf32, #tpu.memory_space<vmem>>, vector<1x32xf32>,
    %c2 = arith.constant 2 : index
    %22 = memref.load %arg0[%c2] : memref<38xi32, #tpu.memory_space<smem>>
    %c18 = arith.constant 18 : index
    %23 = memref.load %arg0[%c18] : memref<38xi32, #tpu.memory_space<smem>>
    %24 = arith.index_cast %22 : i32 to index
    %c0_11 = arith.constant 0 : index
    %25 = vector.load %arg2[%24, %c0_11] : memref<184x32xf32, #tpu.memory_space<vmem>>, vector<1x32xf32>
    %c66 = arith.constant 66 : index
    %c0_12 = arith.constant 0 : index
    %26 = vector.load %arg2[%c66, %c0_12] : memref<184x32xf32, #tpu.memory_space<vmem>>, vector<1x32xf32>
    %27 = arith.addf %25, %26 : vector<1x32xf32>
    %c80_i32_13 = arith.constant 80 : i32
    %28 = arith.addi %c80_i32_13, %23 : i32
    %29 = arith.index_cast %28 : i32 to index
    %c0_14 = arith.constant 0 : index
    %30 = vector.load %arg2[%29, %c0_14] : memref<184x32xf32, #tpu.memory_space<vmem>>, vector<1x32xf32>
    %31 = arith.addf %27, %30 : vector<1x32xf32>
    %c2_15 = arith.constant 2 : index
    %c0_16 = arith.constant 0 : index
    %32 = vector.load %arg7[%c2_15, %c0_16] : memref<16x32xf32, #tpu.memory_space<vmem>>, vector<1x32xf32>
    tpu.vector_store %arg7[%c2_15, %c0_16], %31 {strides = array<i32>} : memref<16x32xf32, #tpu.memory_space<vmem>>, vector<1x32xf32>,
    %c3 = arith.constant 3 : index
    %33 = memref.load %arg0[%c3] : memref<38xi32, #tpu.memory_space<smem>>
    %c19 = arith.constant 19 : index
    %34 = memref.load %arg0[%c19] : memref<38xi32, #tpu.memory_space<smem>>
    %35 = arith.index_cast %33 : i32 to index
    %c0_17 = arith.constant 0 : index
    %36 = vector.load %arg2[%35, %c0_17] : memref<184x32xf32, #tpu.memory_space<vmem>>, vector<1x32xf32>
    %c67 = arith.constant 67 : index
    %c0_18 = arith.constant 0 : index
    %37 = vector.load %arg2[%c67, %c0_18] : memref<184x32xf32, #tpu.memory_space<vmem>>, vector<1x32xf32>
    %38 = arith.addf %36, %37 : vector<1x32xf32>
    %c80_i32_19 = arith.constant 80 : i32
    %39 = arith.addi %c80_i32_19, %34 : i32
    %40 = arith.index_cast %39 : i32 to index
    %c0_20 = arith.constant 0 : index
    %41 = vector.load %arg2[%40, %c0_20] : memref<184x32xf32, #tpu.memory_space<vmem>>, vector<1x32xf32>
    %42 = arith.addf %38, %41 : vector<1x32xf32>
    %c3_21 = arith.constant 3 : index
    %c0_22 = arith.constant 0 : index
    %43 = vector.load %arg7[%c3_21, %c0_22] : memref<16x32xf32, #tpu.memory_space<vmem>>, vector<1x32xf32>
    tpu.vector_store %arg7[%c3_21, %c0_22], %42 {strides = array<i32>} : memref<16x32xf32, #tpu.memory_space<vmem>>, vector<1x32xf32>,
    %c4 = arith.constant 4 : index
    %44 = memref.load %arg0[%c4] : memref<38xi32, #tpu.memory_space<smem>>
    %c20 = arith.constant 20 : index
    %45 = memref.load %arg0[%c20] : memref<38xi32, #tpu.memory_space<smem>>
    %46 = arith.index_cast %44 : i32 to index
    %c0_23 = arith.constant 0 : index
    %47 = vector.load %arg2[%46, %c0_23] : memref<184x32xf32, #tpu.memory_space<vmem>>, vector<1x32xf32>
    %c68 = arith.constant 68 : index
    %c0_24 = arith.constant 0 : index
    %48 = vector.load %arg2[%c68, %c0_24] : memref<184x32xf32, #tpu.memory_space<vmem>>, vector<1x32xf32>
    %49 = arith.addf %47, %48 : vector<1x32xf32>
    %c80_i32_25 = arith.constant 80 : i32
    %50 = arith.addi %c80_i32_25, %45 : i32
    %51 = arith.index_cast %50 : i32 to index
    %c0_26 = arith.constant 0 : index
    %52 = vector.load %arg2[%51, %c0_26] : memref<184x32xf32, #tpu.memory_space<vmem>>, vector<1x32xf32>
    %53 = arith.addf %49, %52 : vector<1x32xf32>
    %c4_27 = arith.constant 4 : index
    %c0_28 = arith.constant 0 : index
    %54 = vector.load %arg7[%c4_27, %c0_28] : memref<16x32xf32, #tpu.memory_space<vmem>>, vector<1x32xf32>
    tpu.vector_store %arg7[%c4_27, %c0_28], %53 {strides = array<i32>} : memref<16x32xf32, #tpu.memory_space<vmem>>, vector<1x32xf32>,
    %c5 = arith.constant 5 : index
    %55 = memref.load %arg0[%c5] : memref<38xi32, #tpu.memory_space<smem>>
    %c21 = arith.constant 21 : index
    %56 = memref.load %arg0[%c21] : memref<38xi32, #tpu.memory_space<smem>>
    %57 = arith.index_cast %55 : i32 to index
    %c0_29 = arith.constant 0 : index
    %58 = vector.load %arg2[%57, %c0_29] : memref<184x32xf32, #tpu.memory_space<vmem>>, vector<1x32xf32>
    %c69 = arith.constant 69 : index
    %c0_30 = arith.constant 0 : index
    %59 = vector.load %arg2[%c69, %c0_30] : memref<184x32xf32, #tpu.memory_space<vmem>>, vector<1x32xf32>
    %60 = arith.addf %58, %59 : vector<1x32xf32>
    %c80_i32_31 = arith.constant 80 : i32
    %61 = arith.addi %c80_i32_31, %56 : i32
    %62 = arith.index_cast %61 : i32 to index
    %c0_32 = arith.constant 0 : index
    %63 = vector.load %arg2[%62, %c0_32] : memref<184x32xf32, #tpu.memory_space<vmem>>, vector<1x32xf32>
    %64 = arith.addf %60, %63 : vector<1x32xf32>
    %c5_33 = arith.constant 5 : index
    %c0_34 = arith.constant 0 : index
    %65 = vector.load %arg7[%c5_33, %c0_34] : memref<16x32xf32, #tpu.memory_space<vmem>>, vector<1x32xf32>
    tpu.vector_store %arg7[%c5_33, %c0_34], %64 {strides = array<i32>} : memref<16x32xf32, #tpu.memory_space<vmem>>, vector<1x32xf32>,
    %c6 = arith.constant 6 : index
    %66 = memref.load %arg0[%c6] : memref<38xi32, #tpu.memory_space<smem>>
    %c22 = arith.constant 22 : index
    %67 = memref.load %arg0[%c22] : memref<38xi32, #tpu.memory_space<smem>>
    %68 = arith.index_cast %66 : i32 to index
    %c0_35 = arith.constant 0 : index
    %69 = vector.load %arg2[%68, %c0_35] : memref<184x32xf32, #tpu.memory_space<vmem>>, vector<1x32xf32>
    %c70 = arith.constant 70 : index
    %c0_36 = arith.constant 0 : index
    %70 = vector.load %arg2[%c70, %c0_36] : memref<184x32xf32, #tpu.memory_space<vmem>>, vector<1x32xf32>
    %71 = arith.addf %69, %70 : vector<1x32xf32>
    %c80_i32_37 = arith.constant 80 : i32
    %72 = arith.addi %c80_i32_37, %67 : i32
    %73 = arith.index_cast %72 : i32 to index
    %c0_38 = arith.constant 0 : index
    %74 = vector.load %arg2[%73, %c0_38] : memref<184x32xf32, #tpu.memory_space<vmem>>, vector<1x32xf32>
    %75 = arith.addf %71, %74 : vector<1x32xf32>
    %c6_39 = arith.constant 6 : index
    %c0_40 = arith.constant 0 : index
    %76 = vector.load %arg7[%c6_39, %c0_40] : memref<16x32xf32, #tpu.memory_space<vmem>>, vector<1x32xf32>
    tpu.vector_store %arg7[%c6_39, %c0_40], %75 {strides = array<i32>} : memref<16x32xf32, #tpu.memory_space<vmem>>, vector<1x32xf32>,
    %c7 = arith.constant 7 : index
    %77 = memref.load %arg0[%c7] : memref<38xi32, #tpu.memory_space<smem>>
    %c23 = arith.constant 23 : index
    %78 = memref.load %arg0[%c23] : memref<38xi32, #tpu.memory_space<smem>>
    %79 = arith.index_cast %77 : i32 to index
    %c0_41 = arith.constant 0 : index
    %80 = vector.load %arg2[%79, %c0_41] : memref<184x32xf32, #tpu.memory_space<vmem>>, vector<1x32xf32>
    %c71 = arith.constant 71 : index
    %c0_42 = arith.constant 0 : index
    %81 = vector.load %arg2[%c71, %c0_42] : memref<184x32xf32, #tpu.memory_space<vmem>>, vector<1x32xf32>
    %82 = arith.addf %80, %81 : vector<1x32xf32>
    %c80_i32_43 = arith.constant 80 : i32
    %83 = arith.addi %c80_i32_43, %78 : i32
    %84 = arith.index_cast %83 : i32 to index
    %c0_44 = arith.constant 0 : index
    %85 = vector.load %arg2[%84, %c0_44] : memref<184x32xf32, #tpu.memory_space<vmem>>, vector<1x32xf32>
    %86 = arith.addf %82, %85 : vector<1x32xf32>
    %c7_45 = arith.constant 7 : index
    %c0_46 = arith.constant 0 : index
    %87 = vector.load %arg7[%c7_45, %c0_46] : memref<16x32xf32, #tpu.memory_space<vmem>>, vector<1x32xf32>
    tpu.vector_store %arg7[%c7_45, %c0_46], %86 {strides = array<i32>} : memref<16x32xf32, #tpu.memory_space<vmem>>, vector<1x32xf32>,
    %c8 = arith.constant 8 : index
    %88 = memref.load %arg0[%c8] : memref<38xi32, #tpu.memory_space<smem>>
    %c24 = arith.constant 24 : index
    %89 = memref.load %arg0[%c24] : memref<38xi32, #tpu.memory_space<smem>>
    %90 = arith.index_cast %88 : i32 to index
    %c0_47 = arith.constant 0 : index
    %91 = vector.load %arg2[%90, %c0_47] : memref<184x32xf32, #tpu.memory_space<vmem>>, vector<1x32xf32>
    %c64_48 = arith.constant 64 : index
    %c0_49 = arith.constant 0 : index
    %92 = vector.load %arg2[%c64_48, %c0_49] : memref<184x32xf32, #tpu.memory_space<vmem>>, vector<1x32xf32>
    %93 = arith.addf %91, %92 : vector<1x32xf32>
    %c80_i32_50 = arith.constant 80 : i32
    %94 = arith.addi %c80_i32_50, %89 : i32
    %95 = arith.index_cast %94 : i32 to index
    %c0_51 = arith.constant 0 : index
    %96 = vector.load %arg2[%95, %c0_51] : memref<184x32xf32, #tpu.memory_space<vmem>>, vector<1x32xf32>
    %97 = arith.addf %93, %96 : vector<1x32xf32>
    %c8_52 = arith.constant 8 : index
    %c0_53 = arith.constant 0 : index
    %98 = vector.load %arg7[%c8_52, %c0_53] : memref<16x32xf32, #tpu.memory_space<vmem>>, vector<1x32xf32>
    tpu.vector_store %arg7[%c8_52, %c0_53], %97 {strides = array<i32>} : memref<16x32xf32, #tpu.memory_space<vmem>>, vector<1x32xf32>,
    %c9 = arith.constant 9 : index
    %99 = memref.load %arg0[%c9] : memref<38xi32, #tpu.memory_space<smem>>
    %c25 = arith.constant 25 : index
    %100 = memref.load %arg0[%c25] : memref<38xi32, #tpu.memory_space<smem>>
    %101 = arith.index_cast %99 : i32 to index
    %c0_54 = arith.constant 0 : index
    %102 = vector.load %arg2[%101, %c0_54] : memref<184x32xf32, #tpu.memory_space<vmem>>, vector<1x32xf32>
    %c65_55 = arith.constant 65 : index
    %c0_56 = arith.constant 0 : index
    %103 = vector.load %arg2[%c65_55, %c0_56] : memref<184x32xf32, #tpu.memory_space<vmem>>, vector<1x32xf32>
    %104 = arith.addf %102, %103 : vector<1x32xf32>
    %c80_i32_57 = arith.constant 80 : i32
    %105 = arith.addi %c80_i32_57, %100 : i32
    %106 = arith.index_cast %105 : i32 to index
    %c0_58 = arith.constant 0 : index
    %107 = vector.load %arg2[%106, %c0_58] : memref<184x32xf32, #tpu.memory_space<vmem>>, vector<1x32xf32>
    %108 = arith.addf %104, %107 : vector<1x32xf32>
    %c9_59 = arith.constant 9 : index
    %c0_60 = arith.constant 0 : index
    %109 = vector.load %arg7[%c9_59, %c0_60] : memref<16x32xf32, #tpu.memory_space<vmem>>, vector<1x32xf32>
    tpu.vector_store %arg7[%c9_59, %c0_60], %108 {strides = array<i32>} : memref<16x32xf32, #tpu.memory_space<vmem>>, vector<1x32xf32>,
    %c10 = arith.constant 10 : index
    %110 = memref.load %arg0[%c10] : memref<38xi32, #tpu.memory_space<smem>>
    %c26 = arith.constant 26 : index
    %111 = memref.load %arg0[%c26] : memref<38xi32, #tpu.memory_space<smem>>
    %112 = arith.index_cast %110 : i32 to index
    %c0_61 = arith.constant 0 : index
    %113 = vector.load %arg2[%112, %c0_61] : memref<184x32xf32, #tpu.memory_space<vmem>>, vector<1x32xf32>
    %c66_62 = arith.constant 66 : index
    %c0_63 = arith.constant 0 : index
    %114 = vector.load %arg2[%c66_62, %c0_63] : memref<184x32xf32, #tpu.memory_space<vmem>>, vector<1x32xf32>
    %115 = arith.addf %113, %114 : vector<1x32xf32>
    %c80_i32_64 = arith.constant 80 : i32
    %116 = arith.addi %c80_i32_64, %111 : i32
    %117 = arith.index_cast %116 : i32 to index
    %c0_65 = arith.constant 0 : index
    %118 = vector.load %arg2[%117, %c0_65] : memref<184x32xf32, #tpu.memory_space<vmem>>, vector<1x32xf32>
    %119 = arith.addf %115, %118 : vector<1x32xf32>
    %c10_66 = arith.constant 10 : index
    %c0_67 = arith.constant 0 : index
    %120 = vector.load %arg7[%c10_66, %c0_67] : memref<16x32xf32, #tpu.memory_space<vmem>>, vector<1x32xf32>
    tpu.vector_store %arg7[%c10_66, %c0_67], %119 {strides = array<i32>} : memref<16x32xf32, #tpu.memory_space<vmem>>, vector<1x32xf32>,
    %c11 = arith.constant 11 : index
    %121 = memref.load %arg0[%c11] : memref<38xi32, #tpu.memory_space<smem>>
    %c27 = arith.constant 27 : index
    %122 = memref.load %arg0[%c27] : memref<38xi32, #tpu.memory_space<smem>>
    %123 = arith.index_cast %121 : i32 to index
    %c0_68 = arith.constant 0 : index
    %124 = vector.load %arg2[%123, %c0_68] : memref<184x32xf32, #tpu.memory_space<vmem>>, vector<1x32xf32>
    %c67_69 = arith.constant 67 : index
    %c0_70 = arith.constant 0 : index
    %125 = vector.load %arg2[%c67_69, %c0_70] : memref<184x32xf32, #tpu.memory_space<vmem>>, vector<1x32xf32>
    %126 = arith.addf %124, %125 : vector<1x32xf32>
    %c80_i32_71 = arith.constant 80 : i32
    %127 = arith.addi %c80_i32_71, %122 : i32
    %128 = arith.index_cast %127 : i32 to index
    %c0_72 = arith.constant 0 : index
    %129 = vector.load %arg2[%128, %c0_72] : memref<184x32xf32, #tpu.memory_space<vmem>>, vector<1x32xf32>
    %130 = arith.addf %126, %129 : vector<1x32xf32>
    %c11_73 = arith.constant 11 : index
    %c0_74 = arith.constant 0 : index
    %131 = vector.load %arg7[%c11_73, %c0_74] : memref<16x32xf32, #tpu.memory_space<vmem>>, vector<1x32xf32>
    tpu.vector_store %arg7[%c11_73, %c0_74], %130 {strides = array<i32>} : memref<16x32xf32, #tpu.memory_space<vmem>>, vector<1x32xf32>,
    %c12 = arith.constant 12 : index
    %132 = memref.load %arg0[%c12] : memref<38xi32, #tpu.memory_space<smem>>
    %c28 = arith.constant 28 : index
    %133 = memref.load %arg0[%c28] : memref<38xi32, #tpu.memory_space<smem>>
    %134 = arith.index_cast %132 : i32 to index
    %c0_75 = arith.constant 0 : index
    %135 = vector.load %arg2[%134, %c0_75] : memref<184x32xf32, #tpu.memory_space<vmem>>, vector<1x32xf32>
    %c68_76 = arith.constant 68 : index
    %c0_77 = arith.constant 0 : index
    %136 = vector.load %arg2[%c68_76, %c0_77] : memref<184x32xf32, #tpu.memory_space<vmem>>, vector<1x32xf32>
    %137 = arith.addf %135, %136 : vector<1x32xf32>
    %c80_i32_78 = arith.constant 80 : i32
    %138 = arith.addi %c80_i32_78, %133 : i32
    %139 = arith.index_cast %138 : i32 to index
    %c0_79 = arith.constant 0 : index
    %140 = vector.load %arg2[%139, %c0_79] : memref<184x32xf32, #tpu.memory_space<vmem>>, vector<1x32xf32>
    %141 = arith.addf %137, %140 : vector<1x32xf32>
    %c12_80 = arith.constant 12 : index
    %c0_81 = arith.constant 0 : index
    %142 = vector.load %arg7[%c12_80, %c0_81] : memref<16x32xf32, #tpu.memory_space<vmem>>, vector<1x32xf32>
    tpu.vector_store %arg7[%c12_80, %c0_81], %141 {strides = array<i32>} : memref<16x32xf32, #tpu.memory_space<vmem>>, vector<1x32xf32>,
    %c13 = arith.constant 13 : index
    %143 = memref.load %arg0[%c13] : memref<38xi32, #tpu.memory_space<smem>>
    %c29 = arith.constant 29 : index
    %144 = memref.load %arg0[%c29] : memref<38xi32, #tpu.memory_space<smem>>
    %145 = arith.index_cast %143 : i32 to index
    %c0_82 = arith.constant 0 : index
    %146 = vector.load %arg2[%145, %c0_82] : memref<184x32xf32, #tpu.memory_space<vmem>>, vector<1x32xf32>
    %c69_83 = arith.constant 69 : index
    %c0_84 = arith.constant 0 : index
    %147 = vector.load %arg2[%c69_83, %c0_84] : memref<184x32xf32, #tpu.memory_space<vmem>>, vector<1x32xf32>
    %148 = arith.addf %146, %147 : vector<1x32xf32>
    %c80_i32_85 = arith.constant 80 : i32
    %149 = arith.addi %c80_i32_85, %144 : i32
    %150 = arith.index_cast %149 : i32 to index
    %c0_86 = arith.constant 0 : index
    %151 = vector.load %arg2[%150, %c0_86] : memref<184x32xf32, #tpu.memory_space<vmem>>, vector<1x32xf32>
    %152 = arith.addf %148, %151 : vector<1x32xf32>
    %c13_87 = arith.constant 13 : index
    %c0_88 = arith.constant 0 : index
    %153 = vector.load %arg7[%c13_87, %c0_88] : memref<16x32xf32, #tpu.memory_space<vmem>>, vector<1x32xf32>
    tpu.vector_store %arg7[%c13_87, %c0_88], %152 {strides = array<i32>} : memref<16x32xf32, #tpu.memory_space<vmem>>, vector<1x32xf32>,
    %c14 = arith.constant 14 : index
    %154 = memref.load %arg0[%c14] : memref<38xi32, #tpu.memory_space<smem>>
    %c30 = arith.constant 30 : index
    %155 = memref.load %arg0[%c30] : memref<38xi32, #tpu.memory_space<smem>>
    %156 = arith.index_cast %154 : i32 to index
    %c0_89 = arith.constant 0 : index
    %157 = vector.load %arg2[%156, %c0_89] : memref<184x32xf32, #tpu.memory_space<vmem>>, vector<1x32xf32>
    %c70_90 = arith.constant 70 : index
    %c0_91 = arith.constant 0 : index
    %158 = vector.load %arg2[%c70_90, %c0_91] : memref<184x32xf32, #tpu.memory_space<vmem>>, vector<1x32xf32>
    %159 = arith.addf %157, %158 : vector<1x32xf32>
    %c80_i32_92 = arith.constant 80 : i32
    %160 = arith.addi %c80_i32_92, %155 : i32
    %161 = arith.index_cast %160 : i32 to index
    %c0_93 = arith.constant 0 : index
    %162 = vector.load %arg2[%161, %c0_93] : memref<184x32xf32, #tpu.memory_space<vmem>>, vector<1x32xf32>
    %163 = arith.addf %159, %162 : vector<1x32xf32>
    %c14_94 = arith.constant 14 : index
    %c0_95 = arith.constant 0 : index
    %164 = vector.load %arg7[%c14_94, %c0_95] : memref<16x32xf32, #tpu.memory_space<vmem>>, vector<1x32xf32>
    tpu.vector_store %arg7[%c14_94, %c0_95], %163 {strides = array<i32>} : memref<16x32xf32, #tpu.memory_space<vmem>>, vector<1x32xf32>,
    %c15 = arith.constant 15 : index
    %165 = memref.load %arg0[%c15] : memref<38xi32, #tpu.memory_space<smem>>
    %c31 = arith.constant 31 : index
    %166 = memref.load %arg0[%c31] : memref<38xi32, #tpu.memory_space<smem>>
    %167 = arith.index_cast %165 : i32 to index
    %c0_96 = arith.constant 0 : index
    %168 = vector.load %arg2[%167, %c0_96] : memref<184x32xf32, #tpu.memory_space<vmem>>, vector<1x32xf32>
    %c71_97 = arith.constant 71 : index
    %c0_98 = arith.constant 0 : index
    %169 = vector.load %arg2[%c71_97, %c0_98] : memref<184x32xf32, #tpu.memory_space<vmem>>, vector<1x32xf32>
    %170 = arith.addf %168, %169 : vector<1x32xf32>
    %c80_i32_99 = arith.constant 80 : i32
    %171 = arith.addi %c80_i32_99, %166 : i32
    %172 = arith.index_cast %171 : i32 to index
    %c0_100 = arith.constant 0 : index
    %173 = vector.load %arg2[%172, %c0_100] : memref<184x32xf32, #tpu.memory_space<vmem>>, vector<1x32xf32>
    %174 = arith.addf %170, %173 : vector<1x32xf32>
    %c15_101 = arith.constant 15 : index
    %c0_102 = arith.constant 0 : index
    %175 = vector.load %arg7[%c15_101, %c0_102] : memref<16x32xf32, #tpu.memory_space<vmem>>, vector<1x32xf32>
    tpu.vector_store %arg7[%c15_101, %c0_102], %174 {strides = array<i32>} : memref<16x32xf32, #tpu.memory_space<vmem>>, vector<1x32xf32>,
    %c0_103 = arith.constant 0 : index
    %c0_104 = arith.constant 0 : index
    %176 = vector.load %arg7[%c0_103, %c0_104] : memref<16x32xf32, #tpu.memory_space<vmem>>, vector<16x32xf32>
    %c82 = arith.constant 82 : index
    %c0_105 = arith.constant 0 : index
    %177 = vector.load %arg2[%c82, %c0_105] : memref<184x32xf32, #tpu.memory_space<vmem>>, vector<1x32xf32>
    %c83 = arith.constant 83 : index
    %c0_106 = arith.constant 0 : index
    %178 = vector.load %arg2[%c83, %c0_106] : memref<184x32xf32, #tpu.memory_space<vmem>>, vector<1x32xf32>
    %cst = arith.constant dense<0.000000e+00> : vector<16xf32>
    %179 = vector.multi_reduction <add>, %176, %cst [1] : vector<16x32xf32> to vector<16xf32>
    %180 = vector.shape_cast %179 : vector<16xf32> to vector<16x1xf32>
    %cst_107 = arith.constant 3.200000e+01 : f32
    %181 = vector.broadcast %cst_107 : f32 to vector<16x1xf32>
    %182 = arith.divf %180, %181 : vector<16x1xf32>
    %183 = vector.broadcast %182 : vector<16x1xf32> to vector<16x32xf32>
    %184 = arith.subf %176, %183 : vector<16x32xf32>
    %185 = arith.mulf %184, %184 : vector<16x32xf32>
    %cst_108 = arith.constant dense<0.000000e+00> : vector<16xf32>
    %186 = vector.multi_reduction <add>, %185, %cst_108 [1] : vector<16x32xf32> to vector<16xf32>
    %187 = vector.shape_cast %186 : vector<16xf32> to vector<16x1xf32>
    %cst_109 = arith.constant 3.200000e+01 : f32
    %188 = vector.broadcast %cst_109 : f32 to vector<16x1xf32>
    %189 = arith.divf %187, %188 : vector<16x1xf32>
    %190 = vector.broadcast %182 : vector<16x1xf32> to vector<16x32xf32>
    %191 = arith.subf %176, %190 : vector<16x32xf32>
    %cst_110 = arith.constant 9.99999996E-13 : f32
    %192 = vector.broadcast %cst_110 : f32 to vector<16x1xf32>
    %193 = arith.addf %189, %192 : vector<16x1xf32>
    %194 = math.rsqrt %193 : vector<16x1xf32>
    %195 = vector.broadcast %194 : vector<16x1xf32> to vector<16x32xf32>
    %196 = arith.mulf %191, %195 : vector<16x32xf32>
    %197 = vector.broadcast %177 : vector<1x32xf32> to vector<16x32xf32>
    %198 = arith.mulf %196, %197 : vector<16x32xf32>
    %199 = vector.broadcast %178 : vector<1x32xf32> to vector<16x32xf32>
    %200 = arith.addf %198, %199 : vector<16x32xf32>
    %c0_111 = arith.constant 0 : index
    %c0_112 = arith.constant 0 : index
    %201 = vector.load %arg1[%c0_111, %c0_112] : memref<2x16xf32, #tpu.memory_space<vmem>>, vector<2x8xf32>
    %cst_113 = arith.constant 1.000000e+00 : f32
    %202 = vector.broadcast %cst_113 : f32 to vector<2x8xf32>
    %203 = arith.subf %202, %201 : vector<2x8xf32>
    %cst_114 = arith.constant -1.000000e+09 : f32
    %204 = vector.broadcast %cst_114 : f32 to vector<2x8xf32>
    %205 = arith.mulf %203, %204 : vector<2x8xf32>
    %c0_115 = arith.constant 0 : index
    %c0_116 = arith.constant 0 : index
    %c0_117 = arith.constant 0 : index
    %206 = vector.load %arg3[%c0_115, %c0_116, %c0_117] : memref<2x128x128xf32, #tpu.memory_space<vmem>>, vector<1x32x128xf32>
    %207 = vector.shape_cast %206 : vector<1x32x128xf32> to vector<32x128xf32>
    %c0_118 = arith.constant 0 : index
    %c32 = arith.constant 32 : index
    %c0_119 = arith.constant 0 : index
    %208 = vector.load %arg3[%c0_118, %c32, %c0_119] : memref<2x128x128xf32, #tpu.memory_space<vmem>>, vector<1x32x64xf32>
    %209 = vector.shape_cast %208 : vector<1x32x64xf32> to vector<32x64xf32>
    %c0_120 = arith.constant 0 : index
    %c64_121 = arith.constant 64 : index
    %c0_122 = arith.constant 0 : index
    %210 = vector.load %arg3[%c0_120, %c64_121, %c0_122] : memref<2x128x128xf32, #tpu.memory_space<vmem>>, vector<1x64x32xf32>
    %211 = vector.shape_cast %210 : vector<1x64x32xf32> to vector<64x32xf32>
    %c0_123 = arith.constant 0 : index
    %c0_124 = arith.constant 0 : index
    %c0_125 = arith.constant 0 : index
    %212 = vector.load %arg4[%c0_123, %c0_124, %c0_125] : memref<2x8x128xf32, #tpu.memory_space<vmem>>, vector<1x1x128xf32>
    %213 = vector.shape_cast %212 : vector<1x1x128xf32> to vector<1x128xf32>
    %c0_126 = arith.constant 0 : index
    %c1_127 = arith.constant 1 : index
    %c0_128 = arith.constant 0 : index
    %214 = vector.load %arg4[%c0_126, %c1_127, %c0_128] : memref<2x8x128xf32, #tpu.memory_space<vmem>>, vector<1x1x32xf32>
    %215 = vector.shape_cast %214 : vector<1x1x32xf32> to vector<1x32xf32>
    %c0_129 = arith.constant 0 : index
    %c2_130 = arith.constant 2 : index
    %c0_131 = arith.constant 0 : index
    %216 = vector.load %arg4[%c0_129, %c2_130, %c0_131] : memref<2x8x128xf32, #tpu.memory_space<vmem>>, vector<1x1x32xf32>
    %217 = vector.shape_cast %216 : vector<1x1x32xf32> to vector<1x32xf32>
    %c0_132 = arith.constant 0 : index
    %c3_133 = arith.constant 3 : index
    %c0_134 = arith.constant 0 : index
    %218 = vector.load %arg4[%c0_132, %c3_133, %c0_134] : memref<2x8x128xf32, #tpu.memory_space<vmem>>, vector<1x1x32xf32>
    %219 = vector.shape_cast %218 : vector<1x1x32xf32> to vector<1x32xf32>
    %c0_135 = arith.constant 0 : index
    %c4_136 = arith.constant 4 : index
    %c0_137 = arith.constant 0 : index
    %220 = vector.load %arg4[%c0_135, %c4_136, %c0_137] : memref<2x8x128xf32, #tpu.memory_space<vmem>>, vector<1x1x64xf32>
    %221 = vector.shape_cast %220 : vector<1x1x64xf32> to vector<1x64xf32>
    %c0_138 = arith.constant 0 : index
    %c5_139 = arith.constant 5 : index
    %c0_140 = arith.constant 0 : index
    %222 = vector.load %arg4[%c0_138, %c5_139, %c0_140] : memref<2x8x128xf32, #tpu.memory_space<vmem>>, vector<1x1x32xf32>
    %223 = vector.shape_cast %222 : vector<1x1x32xf32> to vector<1x32xf32>
    %c0_141 = arith.constant 0 : index
    %c6_142 = arith.constant 6 : index
    %c0_143 = arith.constant 0 : index
    %224 = vector.load %arg4[%c0_141, %c6_142, %c0_143] : memref<2x8x128xf32, #tpu.memory_space<vmem>>, vector<1x1x32xf32>
    %225 = vector.shape_cast %224 : vector<1x1x32xf32> to vector<1x32xf32>
    %c0_144 = arith.constant 0 : index
    %c7_145 = arith.constant 7 : index
    %c0_146 = arith.constant 0 : index
    %226 = vector.load %arg4[%c0_144, %c7_145, %c0_146] : memref<2x8x128xf32, #tpu.memory_space<vmem>>, vector<1x1x32xf32>
    %227 = vector.shape_cast %226 : vector<1x1x32xf32> to vector<1x32xf32>
    %cst_147 = arith.constant dense<0.000000e+00> : vector<16x128xf32>
    %228 = tpu.matmul %200, %207, %cst_147 {dimension_numbers = #tpu.dot_dimension_numbers<[1], [0], [0], [1], [0, 0, 1, 1], [], []>} : vector<16x32xf32>, vector<32x128xf32>, vector<16x128xf32> -> vector<16x128xf32>
    %229 = vector.broadcast %213 : vector<1x128xf32> to vector<16x128xf32>
    %230 = arith.addf %228, %229 : vector<16x128xf32>
    %231 = vector.extract_strided_slice %230 {offsets = [0, 0], sizes = [16, 16], strides = [1, 1]} : vector<16x128xf32> to vector<16x16xf32>
    %232 = vector.shape_cast %231 : vector<16x16xf32> to vector<2x8x16xf32>
    %233 = vector.extract_strided_slice %230 {offsets = [0, 32], sizes = [16, 16], strides = [1, 1]} : vector<16x128xf32> to vector<16x16xf32>
    %234 = vector.shape_cast %233 : vector<16x16xf32> to vector<2x8x16xf32>
    %235 = vector.extract_strided_slice %230 {offsets = [0, 64], sizes = [16, 32], strides = [1, 1]} : vector<16x128xf32> to vector<16x32xf32>
    %236 = vector.shape_cast %235 : vector<16x32xf32> to vector<2x8x32xf32>
    "tpu.trace_start"() <{level = 10 : i32, message = "bqd,bkd->bqk"}> : () -> ()
    %cst_148 = arith.constant dense<0.000000e+00> : vector<2x8x8xf32>
    %237 = tpu.matmul %232, %234, %cst_148 {dimension_numbers = #tpu.dot_dimension_numbers<[2], [2], [1], [1], [0, 0, 0, 1, 1, 1], [0], [0]>} : vector<2x8x16xf32>, vector<2x8x16xf32>, vector<2x8x8xf32> -> vector<2x8x8xf32>
    "tpu.trace_stop"() : () -> ()
    %cst_149 = arith.constant 2.500000e-01 : f32
    %238 = vector.broadcast %cst_149 : f32 to vector<2x8x8xf32>
    %239 = arith.mulf %237, %238 : vector<2x8x8xf32>
    %240 = vector.shape_cast %205 : vector<2x8xf32> to vector<2x1x8xf32>
    %241 = vector.broadcast %240 : vector<2x1x8xf32> to vector<2x8x8xf32>
    %242 = arith.addf %239, %241 : vector<2x8x8xf32>
    %cst_150 = arith.constant dense<0xFF800000> : vector<2x8xf32>
    %243 = vector.multi_reduction <maximumf>, %242, %cst_150 [2] : vector<2x8x8xf32> to vector<2x8xf32>
    %244 = vector.shape_cast %243 : vector<2x8xf32> to vector<2x8x1xf32>
    %245 = vector.broadcast %244 : vector<2x8x1xf32> to vector<2x8x8xf32>
    %246 = arith.subf %242, %245 : vector<2x8x8xf32>
    %247 = math.exp %246 : vector<2x8x8xf32>
    %cst_151 = arith.constant dense<0.000000e+00> : vector<2x8xf32>
    %248 = vector.multi_reduction <add>, %247, %cst_151 [2] : vector<2x8x8xf32> to vector<2x8xf32>
    %249 = vector.shape_cast %248 : vector<2x8xf32> to vector<2x8x1xf32>
    %250 = vector.broadcast %249 : vector<2x8x1xf32> to vector<2x8x8xf32>
    %251 = arith.divf %247, %250 : vector<2x8x8xf32>
    "tpu.trace_start"() <{level = 10 : i32, message = "bqk,bkd->bqd"}> : () -> ()
    %cst_152 = arith.constant dense<0.000000e+00> : vector<2x8x32xf32>
    %252 = tpu.matmul %251, %236, %cst_152 {dimension_numbers = #tpu.dot_dimension_numbers<[2], [1], [1], [2], [0, 0, 0, 1, 1, 2], [0], [0]>} : vector<2x8x8xf32>, vector<2x8x32xf32>, vector<2x8x32xf32> -> vector<2x8x32xf32>
    "tpu.trace_stop"() : () -> ()
    %253 = vector.extract_strided_slice %230 {offsets = [0, 16], sizes = [16, 16], strides = [1, 1]} : vector<16x128xf32> to vector<16x16xf32>
    %254 = vector.shape_cast %253 : vector<16x16xf32> to vector<2x8x16xf32>
    %255 = vector.extract_strided_slice %230 {offsets = [0, 48], sizes = [16, 16], strides = [1, 1]} : vector<16x128xf32> to vector<16x16xf32>
    %256 = vector.shape_cast %255 : vector<16x16xf32> to vector<2x8x16xf32>
    %257 = vector.extract_strided_slice %230 {offsets = [0, 96], sizes = [16, 32], strides = [1, 1]} : vector<16x128xf32> to vector<16x32xf32>
    %258 = vector.shape_cast %257 : vector<16x32xf32> to vector<2x8x32xf32>
    "tpu.trace_start"() <{level = 10 : i32, message = "bqd,bkd->bqk"}> : () -> ()
    %cst_153 = arith.constant dense<0.000000e+00> : vector<2x8x8xf32>
    %259 = tpu.matmul %254, %256, %cst_153 {dimension_numbers = #tpu.dot_dimension_numbers<[2], [2], [1], [1], [0, 0, 0, 1, 1, 1], [0], [0]>} : vector<2x8x16xf32>, vector<2x8x16xf32>, vector<2x8x8xf32> -> vector<2x8x8xf32>
    "tpu.trace_stop"() : () -> ()
    %cst_154 = arith.constant 2.500000e-01 : f32
    %260 = vector.broadcast %cst_154 : f32 to vector<2x8x8xf32>
    %261 = arith.mulf %259, %260 : vector<2x8x8xf32>
    %262 = vector.shape_cast %205 : vector<2x8xf32> to vector<2x1x8xf32>
    %263 = vector.broadcast %262 : vector<2x1x8xf32> to vector<2x8x8xf32>
    %264 = arith.addf %261, %263 : vector<2x8x8xf32>
    %cst_155 = arith.constant dense<0xFF800000> : vector<2x8xf32>
    %265 = vector.multi_reduction <maximumf>, %264, %cst_155 [2] : vector<2x8x8xf32> to vector<2x8xf32>
    %266 = vector.shape_cast %265 : vector<2x8xf32> to vector<2x8x1xf32>
    %267 = vector.broadcast %266 : vector<2x8x1xf32> to vector<2x8x8xf32>
    %268 = arith.subf %264, %267 : vector<2x8x8xf32>
    %269 = math.exp %268 : vector<2x8x8xf32>
    %cst_156 = arith.constant dense<0.000000e+00> : vector<2x8xf32>
    %270 = vector.multi_reduction <add>, %269, %cst_156 [2] : vector<2x8x8xf32> to vector<2x8xf32>
    %271 = vector.shape_cast %270 : vector<2x8xf32> to vector<2x8x1xf32>
    %272 = vector.broadcast %271 : vector<2x8x1xf32> to vector<2x8x8xf32>
    %273 = arith.divf %269, %272 : vector<2x8x8xf32>
    "tpu.trace_start"() <{level = 10 : i32, message = "bqk,bkd->bqd"}> : () -> ()
    %cst_157 = arith.constant dense<0.000000e+00> : vector<2x8x32xf32>
    %274 = tpu.matmul %273, %258, %cst_157 {dimension_numbers = #tpu.dot_dimension_numbers<[2], [1], [1], [2], [0, 0, 0, 1, 1, 2], [0], [0]>} : vector<2x8x8xf32>, vector<2x8x32xf32>, vector<2x8x32xf32> -> vector<2x8x32xf32>
    "tpu.trace_stop"() : () -> ()
    %275 = arith.addf %252, %274 : vector<2x8x32xf32>
    %276 = vector.shape_cast %275 : vector<2x8x32xf32> to vector<16x32xf32>
    %277 = vector.broadcast %215 : vector<1x32xf32> to vector<16x32xf32>
    %278 = arith.addf %276, %277 : vector<16x32xf32>
    %279 = arith.addf %278, %200 : vector<16x32xf32>
    %cst_158 = arith.constant dense<0.000000e+00> : vector<16xf32>
    %280 = vector.multi_reduction <add>, %279, %cst_158 [1] : vector<16x32xf32> to vector<16xf32>
    %281 = vector.shape_cast %280 : vector<16xf32> to vector<16x1xf32>
    %cst_159 = arith.constant 3.200000e+01 : f32
    %282 = vector.broadcast %cst_159 : f32 to vector<16x1xf32>
    %283 = arith.divf %281, %282 : vector<16x1xf32>
    %284 = vector.broadcast %283 : vector<16x1xf32> to vector<16x32xf32>
    %285 = arith.subf %279, %284 : vector<16x32xf32>
    %286 = arith.mulf %285, %285 : vector<16x32xf32>
    %cst_160 = arith.constant dense<0.000000e+00> : vector<16xf32>
    %287 = vector.multi_reduction <add>, %286, %cst_160 [1] : vector<16x32xf32> to vector<16xf32>
    %288 = vector.shape_cast %287 : vector<16xf32> to vector<16x1xf32>
    %cst_161 = arith.constant 3.200000e+01 : f32
    %289 = vector.broadcast %cst_161 : f32 to vector<16x1xf32>
    %290 = arith.divf %288, %289 : vector<16x1xf32>
    %291 = vector.broadcast %283 : vector<16x1xf32> to vector<16x32xf32>
    %292 = arith.subf %279, %291 : vector<16x32xf32>
    %cst_162 = arith.constant 9.99999996E-13 : f32
    %293 = vector.broadcast %cst_162 : f32 to vector<16x1xf32>
    %294 = arith.addf %290, %293 : vector<16x1xf32>
    %295 = math.rsqrt %294 : vector<16x1xf32>
    %296 = vector.broadcast %295 : vector<16x1xf32> to vector<16x32xf32>
    %297 = arith.mulf %292, %296 : vector<16x32xf32>
    %298 = vector.broadcast %217 : vector<1x32xf32> to vector<16x32xf32>
    %299 = arith.mulf %297, %298 : vector<16x32xf32>
    %300 = vector.broadcast %219 : vector<1x32xf32> to vector<16x32xf32>
    %301 = arith.addf %299, %300 : vector<16x32xf32>
    %cst_163 = arith.constant dense<0.000000e+00> : vector<16x64xf32>
    %302 = tpu.matmul %301, %209, %cst_163 {dimension_numbers = #tpu.dot_dimension_numbers<[1], [0], [0], [1], [0, 0, 1, 1], [], []>} : vector<16x32xf32>, vector<32x64xf32>, vector<16x64xf32> -> vector<16x64xf32>
    %303 = vector.broadcast %221 : vector<1x64xf32> to vector<16x64xf32>
    %304 = arith.addf %302, %303 : vector<16x64xf32>
    %305 = arith.mulf %304, %304 : vector<16x64xf32>
    %306 = arith.mulf %304, %305 : vector<16x64xf32>
    %cst_164 = arith.constant 4.471500e-02 : f32
    %307 = vector.broadcast %cst_164 : f32 to vector<16x64xf32>
    %308 = arith.mulf %307, %306 : vector<16x64xf32>
    %309 = arith.addf %304, %308 : vector<16x64xf32>
    %cst_165 = arith.constant 0.797884583 : f32
    %310 = vector.broadcast %cst_165 : f32 to vector<16x64xf32>
    %311 = arith.mulf %310, %309 : vector<16x64xf32>
    %312 = math.tanh %311 : vector<16x64xf32>
    %cst_166 = arith.constant 1.000000e+00 : f32
    %313 = vector.broadcast %cst_166 : f32 to vector<16x64xf32>
    %314 = arith.addf %313, %312 : vector<16x64xf32>
    %cst_167 = arith.constant 5.000000e-01 : f32
    %315 = vector.broadcast %cst_167 : f32 to vector<16x64xf32>
    %316 = arith.mulf %315, %314 : vector<16x64xf32>
    %317 = arith.mulf %304, %316 : vector<16x64xf32>
    %cst_168 = arith.constant dense<0.000000e+00> : vector<16x32xf32>
    %318 = tpu.matmul %317, %211, %cst_168 {dimension_numbers = #tpu.dot_dimension_numbers<[1], [0], [0], [1], [0, 0, 1, 1], [], []>} : vector<16x64xf32>, vector<64x32xf32>, vector<16x32xf32> -> vector<16x32xf32>
    %319 = vector.broadcast %223 : vector<1x32xf32> to vector<16x32xf32>
    %320 = arith.addf %318, %319 : vector<16x32xf32>
    %321 = arith.addf %320, %301 : vector<16x32xf32>
    %cst_169 = arith.constant dense<0.000000e+00> : vector<16xf32>
    %322 = vector.multi_reduction <add>, %321, %cst_169 [1] : vector<16x32xf32> to vector<16xf32>
    %323 = vector.shape_cast %322 : vector<16xf32> to vector<16x1xf32>
    %cst_170 = arith.constant 3.200000e+01 : f32
    %324 = vector.broadcast %cst_170 : f32 to vector<16x1xf32>
    %325 = arith.divf %323, %324 : vector<16x1xf32>
    %326 = vector.broadcast %325 : vector<16x1xf32> to vector<16x32xf32>
    %327 = arith.subf %321, %326 : vector<16x32xf32>
    %328 = arith.mulf %327, %327 : vector<16x32xf32>
    %cst_171 = arith.constant dense<0.000000e+00> : vector<16xf32>
    %329 = vector.multi_reduction <add>, %328, %cst_171 [1] : vector<16x32xf32> to vector<16xf32>
    %330 = vector.shape_cast %329 : vector<16xf32> to vector<16x1xf32>
    %cst_172 = arith.constant 3.200000e+01 : f32
    %331 = vector.broadcast %cst_172 : f32 to vector<16x1xf32>
    %332 = arith.divf %330, %331 : vector<16x1xf32>
    %333 = vector.broadcast %325 : vector<16x1xf32> to vector<16x32xf32>
    %334 = arith.subf %321, %333 : vector<16x32xf32>
    %cst_173 = arith.constant 9.99999996E-13 : f32
    %335 = vector.broadcast %cst_173 : f32 to vector<16x1xf32>
    %336 = arith.addf %332, %335 : vector<16x1xf32>
    %337 = math.rsqrt %336 : vector<16x1xf32>
    %338 = vector.broadcast %337 : vector<16x1xf32> to vector<16x32xf32>
    %339 = arith.mulf %334, %338 : vector<16x32xf32>
    %340 = vector.broadcast %225 : vector<1x32xf32> to vector<16x32xf32>
    %341 = arith.mulf %339, %340 : vector<16x32xf32>
    %342 = vector.broadcast %227 : vector<1x32xf32> to vector<16x32xf32>
    %343 = arith.addf %341, %342 : vector<16x32xf32>
    %c1_174 = arith.constant 1 : index
    %c0_175 = arith.constant 0 : index
    %c0_176 = arith.constant 0 : index
    %344 = vector.load %arg3[%c1_174, %c0_175, %c0_176] : memref<2x128x128xf32, #tpu.memory_space<vmem>>, vector<1x32x128xf32>
    %345 = vector.shape_cast %344 : vector<1x32x128xf32> to vector<32x128xf32>
    %c1_177 = arith.constant 1 : index
    %c32_178 = arith.constant 32 : index
    %c0_179 = arith.constant 0 : index
    %346 = vector.load %arg3[%c1_177, %c32_178, %c0_179] : memref<2x128x128xf32, #tpu.memory_space<vmem>>, vector<1x32x64xf32>
    %347 = vector.shape_cast %346 : vector<1x32x64xf32> to vector<32x64xf32>
    %c1_180 = arith.constant 1 : index
    %c64_181 = arith.constant 64 : index
    %c0_182 = arith.constant 0 : index
    %348 = vector.load %arg3[%c1_180, %c64_181, %c0_182] : memref<2x128x128xf32, #tpu.memory_space<vmem>>, vector<1x64x32xf32>
    %349 = vector.shape_cast %348 : vector<1x64x32xf32> to vector<64x32xf32>
    %c1_183 = arith.constant 1 : index
    %c0_184 = arith.constant 0 : index
    %c0_185 = arith.constant 0 : index
    %350 = vector.load %arg4[%c1_183, %c0_184, %c0_185] : memref<2x8x128xf32, #tpu.memory_space<vmem>>, vector<1x1x128xf32>
    %351 = vector.shape_cast %350 : vector<1x1x128xf32> to vector<1x128xf32>
    %c1_186 = arith.constant 1 : index
    %c1_187 = arith.constant 1 : index
    %c0_188 = arith.constant 0 : index
    %352 = vector.load %arg4[%c1_186, %c1_187, %c0_188] : memref<2x8x128xf32, #tpu.memory_space<vmem>>, vector<1x1x32xf32>
    %353 = vector.shape_cast %352 : vector<1x1x32xf32> to vector<1x32xf32>
    %c1_189 = arith.constant 1 : index
    %c2_190 = arith.constant 2 : index
    %c0_191 = arith.constant 0 : index
    %354 = vector.load %arg4[%c1_189, %c2_190, %c0_191] : memref<2x8x128xf32, #tpu.memory_space<vmem>>, vector<1x1x32xf32>
    %355 = vector.shape_cast %354 : vector<1x1x32xf32> to vector<1x32xf32>
    %c1_192 = arith.constant 1 : index
    %c3_193 = arith.constant 3 : index
    %c0_194 = arith.constant 0 : index
    %356 = vector.load %arg4[%c1_192, %c3_193, %c0_194] : memref<2x8x128xf32, #tpu.memory_space<vmem>>, vector<1x1x32xf32>
    %357 = vector.shape_cast %356 : vector<1x1x32xf32> to vector<1x32xf32>
    %c1_195 = arith.constant 1 : index
    %c4_196 = arith.constant 4 : index
    %c0_197 = arith.constant 0 : index
    %358 = vector.load %arg4[%c1_195, %c4_196, %c0_197] : memref<2x8x128xf32, #tpu.memory_space<vmem>>, vector<1x1x64xf32>
    %359 = vector.shape_cast %358 : vector<1x1x64xf32> to vector<1x64xf32>
    %c1_198 = arith.constant 1 : index
    %c5_199 = arith.constant 5 : index
    %c0_200 = arith.constant 0 : index
    %360 = vector.load %arg4[%c1_198, %c5_199, %c0_200] : memref<2x8x128xf32, #tpu.memory_space<vmem>>, vector<1x1x32xf32>
    %361 = vector.shape_cast %360 : vector<1x1x32xf32> to vector<1x32xf32>
    %c1_201 = arith.constant 1 : index
    %c6_202 = arith.constant 6 : index
    %c0_203 = arith.constant 0 : index
    %362 = vector.load %arg4[%c1_201, %c6_202, %c0_203] : memref<2x8x128xf32, #tpu.memory_space<vmem>>, vector<1x1x32xf32>
    %363 = vector.shape_cast %362 : vector<1x1x32xf32> to vector<1x32xf32>
    %c1_204 = arith.constant 1 : index
    %c7_205 = arith.constant 7 : index
    %c0_206 = arith.constant 0 : index
    %364 = vector.load %arg4[%c1_204, %c7_205, %c0_206] : memref<2x8x128xf32, #tpu.memory_space<vmem>>, vector<1x1x32xf32>
    %365 = vector.shape_cast %364 : vector<1x1x32xf32> to vector<1x32xf32>
    %cst_207 = arith.constant dense<0.000000e+00> : vector<16x128xf32>
    %366 = tpu.matmul %343, %345, %cst_207 {dimension_numbers = #tpu.dot_dimension_numbers<[1], [0], [0], [1], [0, 0, 1, 1], [], []>} : vector<16x32xf32>, vector<32x128xf32>, vector<16x128xf32> -> vector<16x128xf32>
    %367 = vector.broadcast %351 : vector<1x128xf32> to vector<16x128xf32>
    %368 = arith.addf %366, %367 : vector<16x128xf32>
    %369 = vector.extract_strided_slice %368 {offsets = [0, 0], sizes = [16, 16], strides = [1, 1]} : vector<16x128xf32> to vector<16x16xf32>
    %370 = vector.shape_cast %369 : vector<16x16xf32> to vector<2x8x16xf32>
    %371 = vector.extract_strided_slice %368 {offsets = [0, 32], sizes = [16, 16], strides = [1, 1]} : vector<16x128xf32> to vector<16x16xf32>
    %372 = vector.shape_cast %371 : vector<16x16xf32> to vector<2x8x16xf32>
    %373 = vector.extract_strided_slice %368 {offsets = [0, 64], sizes = [16, 32], strides = [1, 1]} : vector<16x128xf32> to vector<16x32xf32>
    %374 = vector.shape_cast %373 : vector<16x32xf32> to vector<2x8x32xf32>
    "tpu.trace_start"() <{level = 10 : i32, message = "bqd,bkd->bqk"}> : () -> ()
    %cst_208 = arith.constant dense<0.000000e+00> : vector<2x8x8xf32>
    %375 = tpu.matmul %370, %372, %cst_208 {dimension_numbers = #tpu.dot_dimension_numbers<[2], [2], [1], [1], [0, 0, 0, 1, 1, 1], [0], [0]>} : vector<2x8x16xf32>, vector<2x8x16xf32>, vector<2x8x8xf32> -> vector<2x8x8xf32>
    "tpu.trace_stop"() : () -> ()
    %cst_209 = arith.constant 2.500000e-01 : f32
    %376 = vector.broadcast %cst_209 : f32 to vector<2x8x8xf32>
    %377 = arith.mulf %375, %376 : vector<2x8x8xf32>
    %378 = vector.shape_cast %205 : vector<2x8xf32> to vector<2x1x8xf32>
    %379 = vector.broadcast %378 : vector<2x1x8xf32> to vector<2x8x8xf32>
    %380 = arith.addf %377, %379 : vector<2x8x8xf32>
    %cst_210 = arith.constant dense<0xFF800000> : vector<2x8xf32>
    %381 = vector.multi_reduction <maximumf>, %380, %cst_210 [2] : vector<2x8x8xf32> to vector<2x8xf32>
    %382 = vector.shape_cast %381 : vector<2x8xf32> to vector<2x8x1xf32>
    %383 = vector.broadcast %382 : vector<2x8x1xf32> to vector<2x8x8xf32>
    %384 = arith.subf %380, %383 : vector<2x8x8xf32>
    %385 = math.exp %384 : vector<2x8x8xf32>
    %cst_211 = arith.constant dense<0.000000e+00> : vector<2x8xf32>
    %386 = vector.multi_reduction <add>, %385, %cst_211 [2] : vector<2x8x8xf32> to vector<2x8xf32>
    %387 = vector.shape_cast %386 : vector<2x8xf32> to vector<2x8x1xf32>
    %388 = vector.broadcast %387 : vector<2x8x1xf32> to vector<2x8x8xf32>
    %389 = arith.divf %385, %388 : vector<2x8x8xf32>
    "tpu.trace_start"() <{level = 10 : i32, message = "bqk,bkd->bqd"}> : () -> ()
    %cst_212 = arith.constant dense<0.000000e+00> : vector<2x8x32xf32>
    %390 = tpu.matmul %389, %374, %cst_212 {dimension_numbers = #tpu.dot_dimension_numbers<[2], [1], [1], [2], [0, 0, 0, 1, 1, 2], [0], [0]>} : vector<2x8x8xf32>, vector<2x8x32xf32>, vector<2x8x32xf32> -> vector<2x8x32xf32>
    "tpu.trace_stop"() : () -> ()
    %391 = vector.extract_strided_slice %368 {offsets = [0, 16], sizes = [16, 16], strides = [1, 1]} : vector<16x128xf32> to vector<16x16xf32>
    %392 = vector.shape_cast %391 : vector<16x16xf32> to vector<2x8x16xf32>
    %393 = vector.extract_strided_slice %368 {offsets = [0, 48], sizes = [16, 16], strides = [1, 1]} : vector<16x128xf32> to vector<16x16xf32>
    %394 = vector.shape_cast %393 : vector<16x16xf32> to vector<2x8x16xf32>
    %395 = vector.extract_strided_slice %368 {offsets = [0, 96], sizes = [16, 32], strides = [1, 1]} : vector<16x128xf32> to vector<16x32xf32>
    %396 = vector.shape_cast %395 : vector<16x32xf32> to vector<2x8x32xf32>
    "tpu.trace_start"() <{level = 10 : i32, message = "bqd,bkd->bqk"}> : () -> ()
    %cst_213 = arith.constant dense<0.000000e+00> : vector<2x8x8xf32>
    %397 = tpu.matmul %392, %394, %cst_213 {dimension_numbers = #tpu.dot_dimension_numbers<[2], [2], [1], [1], [0, 0, 0, 1, 1, 1], [0], [0]>} : vector<2x8x16xf32>, vector<2x8x16xf32>, vector<2x8x8xf32> -> vector<2x8x8xf32>
    "tpu.trace_stop"() : () -> ()
    %cst_214 = arith.constant 2.500000e-01 : f32
    %398 = vector.broadcast %cst_214 : f32 to vector<2x8x8xf32>
    %399 = arith.mulf %397, %398 : vector<2x8x8xf32>
    %400 = vector.shape_cast %205 : vector<2x8xf32> to vector<2x1x8xf32>
    %401 = vector.broadcast %400 : vector<2x1x8xf32> to vector<2x8x8xf32>
    %402 = arith.addf %399, %401 : vector<2x8x8xf32>
    %cst_215 = arith.constant dense<0xFF800000> : vector<2x8xf32>
    %403 = vector.multi_reduction <maximumf>, %402, %cst_215 [2] : vector<2x8x8xf32> to vector<2x8xf32>
    %404 = vector.shape_cast %403 : vector<2x8xf32> to vector<2x8x1xf32>
    %405 = vector.broadcast %404 : vector<2x8x1xf32> to vector<2x8x8xf32>
    %406 = arith.subf %402, %405 : vector<2x8x8xf32>
    %407 = math.exp %406 : vector<2x8x8xf32>
    %cst_216 = arith.constant dense<0.000000e+00> : vector<2x8xf32>
    %408 = vector.multi_reduction <add>, %407, %cst_216 [2] : vector<2x8x8xf32> to vector<2x8xf32>
    %409 = vector.shape_cast %408 : vector<2x8xf32> to vector<2x8x1xf32>
    %410 = vector.broadcast %409 : vector<2x8x1xf32> to vector<2x8x8xf32>
    %411 = arith.divf %407, %410 : vector<2x8x8xf32>
    "tpu.trace_start"() <{level = 10 : i32, message = "bqk,bkd->bqd"}> : () -> ()
    %cst_217 = arith.constant dense<0.000000e+00> : vector<2x8x32xf32>
    %412 = tpu.matmul %411, %396, %cst_217 {dimension_numbers = #tpu.dot_dimension_numbers<[2], [1], [1], [2], [0, 0, 0, 1, 1, 2], [0], [0]>} : vector<2x8x8xf32>, vector<2x8x32xf32>, vector<2x8x32xf32> -> vector<2x8x32xf32>
    "tpu.trace_stop"() : () -> ()
    %413 = arith.addf %390, %412 : vector<2x8x32xf32>
    %414 = vector.shape_cast %413 : vector<2x8x32xf32> to vector<16x32xf32>
    %415 = vector.broadcast %353 : vector<1x32xf32> to vector<16x32xf32>
    %416 = arith.addf %414, %415 : vector<16x32xf32>
    %417 = arith.addf %416, %343 : vector<16x32xf32>
    %cst_218 = arith.constant dense<0.000000e+00> : vector<16xf32>
    %418 = vector.multi_reduction <add>, %417, %cst_218 [1] : vector<16x32xf32> to vector<16xf32>
    %419 = vector.shape_cast %418 : vector<16xf32> to vector<16x1xf32>
    %cst_219 = arith.constant 3.200000e+01 : f32
    %420 = vector.broadcast %cst_219 : f32 to vector<16x1xf32>
    %421 = arith.divf %419, %420 : vector<16x1xf32>
    %422 = vector.broadcast %421 : vector<16x1xf32> to vector<16x32xf32>
    %423 = arith.subf %417, %422 : vector<16x32xf32>
    %424 = arith.mulf %423, %423 : vector<16x32xf32>
    %cst_220 = arith.constant dense<0.000000e+00> : vector<16xf32>
    %425 = vector.multi_reduction <add>, %424, %cst_220 [1] : vector<16x32xf32> to vector<16xf32>
    %426 = vector.shape_cast %425 : vector<16xf32> to vector<16x1xf32>
    %cst_221 = arith.constant 3.200000e+01 : f32
    %427 = vector.broadcast %cst_221 : f32 to vector<16x1xf32>
    %428 = arith.divf %426, %427 : vector<16x1xf32>
    %429 = vector.broadcast %421 : vector<16x1xf32> to vector<16x32xf32>
    %430 = arith.subf %417, %429 : vector<16x32xf32>
    %cst_222 = arith.constant 9.99999996E-13 : f32
    %431 = vector.broadcast %cst_222 : f32 to vector<16x1xf32>
    %432 = arith.addf %428, %431 : vector<16x1xf32>
    %433 = math.rsqrt %432 : vector<16x1xf32>
    %434 = vector.broadcast %433 : vector<16x1xf32> to vector<16x32xf32>
    %435 = arith.mulf %430, %434 : vector<16x32xf32>
    %436 = vector.broadcast %355 : vector<1x32xf32> to vector<16x32xf32>
    %437 = arith.mulf %435, %436 : vector<16x32xf32>
    %438 = vector.broadcast %357 : vector<1x32xf32> to vector<16x32xf32>
    %439 = arith.addf %437, %438 : vector<16x32xf32>
    %cst_223 = arith.constant dense<0.000000e+00> : vector<16x64xf32>
    %440 = tpu.matmul %439, %347, %cst_223 {dimension_numbers = #tpu.dot_dimension_numbers<[1], [0], [0], [1], [0, 0, 1, 1], [], []>} : vector<16x32xf32>, vector<32x64xf32>, vector<16x64xf32> -> vector<16x64xf32>
    %441 = vector.broadcast %359 : vector<1x64xf32> to vector<16x64xf32>
    %442 = arith.addf %440, %441 : vector<16x64xf32>
    %443 = arith.mulf %442, %442 : vector<16x64xf32>
    %444 = arith.mulf %442, %443 : vector<16x64xf32>
    %cst_224 = arith.constant 4.471500e-02 : f32
    %445 = vector.broadcast %cst_224 : f32 to vector<16x64xf32>
    %446 = arith.mulf %445, %444 : vector<16x64xf32>
    %447 = arith.addf %442, %446 : vector<16x64xf32>
    %cst_225 = arith.constant 0.797884583 : f32
    %448 = vector.broadcast %cst_225 : f32 to vector<16x64xf32>
    %449 = arith.mulf %448, %447 : vector<16x64xf32>
    %450 = math.tanh %449 : vector<16x64xf32>
    %cst_226 = arith.constant 1.000000e+00 : f32
    %451 = vector.broadcast %cst_226 : f32 to vector<16x64xf32>
    %452 = arith.addf %451, %450 : vector<16x64xf32>
    %cst_227 = arith.constant 5.000000e-01 : f32
    %453 = vector.broadcast %cst_227 : f32 to vector<16x64xf32>
    %454 = arith.mulf %453, %452 : vector<16x64xf32>
    %455 = arith.mulf %442, %454 : vector<16x64xf32>
    %cst_228 = arith.constant dense<0.000000e+00> : vector<16x32xf32>
    %456 = tpu.matmul %455, %349, %cst_228 {dimension_numbers = #tpu.dot_dimension_numbers<[1], [0], [0], [1], [0, 0, 1, 1], [], []>} : vector<16x64xf32>, vector<64x32xf32>, vector<16x32xf32> -> vector<16x32xf32>
    %457 = vector.broadcast %361 : vector<1x32xf32> to vector<16x32xf32>
    %458 = arith.addf %456, %457 : vector<16x32xf32>
    %459 = arith.addf %458, %439 : vector<16x32xf32>
    %cst_229 = arith.constant dense<0.000000e+00> : vector<16xf32>
    %460 = vector.multi_reduction <add>, %459, %cst_229 [1] : vector<16x32xf32> to vector<16xf32>
    %461 = vector.shape_cast %460 : vector<16xf32> to vector<16x1xf32>
    %cst_230 = arith.constant 3.200000e+01 : f32
    %462 = vector.broadcast %cst_230 : f32 to vector<16x1xf32>
    %463 = arith.divf %461, %462 : vector<16x1xf32>
    %464 = vector.broadcast %463 : vector<16x1xf32> to vector<16x32xf32>
    %465 = arith.subf %459, %464 : vector<16x32xf32>
    %466 = arith.mulf %465, %465 : vector<16x32xf32>
    %cst_231 = arith.constant dense<0.000000e+00> : vector<16xf32>
    %467 = vector.multi_reduction <add>, %466, %cst_231 [1] : vector<16x32xf32> to vector<16xf32>
    %468 = vector.shape_cast %467 : vector<16xf32> to vector<16x1xf32>
    %cst_232 = arith.constant 3.200000e+01 : f32
    %469 = vector.broadcast %cst_232 : f32 to vector<16x1xf32>
    %470 = arith.divf %468, %469 : vector<16x1xf32>
    %471 = vector.broadcast %463 : vector<16x1xf32> to vector<16x32xf32>
    %472 = arith.subf %459, %471 : vector<16x32xf32>
    %cst_233 = arith.constant 9.99999996E-13 : f32
    %473 = vector.broadcast %cst_233 : f32 to vector<16x1xf32>
    %474 = arith.addf %470, %473 : vector<16x1xf32>
    %475 = math.rsqrt %474 : vector<16x1xf32>
    %476 = vector.broadcast %475 : vector<16x1xf32> to vector<16x32xf32>
    %477 = arith.mulf %472, %476 : vector<16x32xf32>
    %478 = vector.broadcast %363 : vector<1x32xf32> to vector<16x32xf32>
    %479 = arith.mulf %477, %478 : vector<16x32xf32>
    %480 = vector.broadcast %365 : vector<1x32xf32> to vector<16x32xf32>
    %481 = arith.addf %479, %480 : vector<16x32xf32>
    %c0_234 = arith.constant 0 : index
    %c0_235 = arith.constant 0 : index
    %482 = vector.load %arg7[%c0_234, %c0_235] : memref<16x32xf32, #tpu.memory_space<vmem>>, vector<16x32xf32>
    tpu.vector_store %arg7[%c0_234, %c0_235], %481 {strides = array<i32>} : memref<16x32xf32, #tpu.memory_space<vmem>>, vector<16x32xf32>,
    %c32_236 = arith.constant 32 : index
    %483 = memref.load %arg0[%c32_236] : memref<38xi32, #tpu.memory_space<smem>>
    %484 = arith.index_cast %483 : i32 to index
    %c0_237 = arith.constant 0 : index
    %485 = vector.load %arg7[%484, %c0_237] : memref<16x32xf32, #tpu.memory_space<vmem>>, vector<1x32xf32>
    %c0_238 = arith.constant 0 : index
    %c0_239 = arith.constant 0 : index
    %486 = vector.load %arg8[%c0_238, %c0_239] : memref<6x32xf32, #tpu.memory_space<vmem>>, vector<1x32xf32>
    tpu.vector_store %arg8[%c0_238, %c0_239], %485 {strides = array<i32>} : memref<6x32xf32, #tpu.memory_space<vmem>>, vector<1x32xf32>,
    %c33 = arith.constant 33 : index
    %487 = memref.load %arg0[%c33] : memref<38xi32, #tpu.memory_space<smem>>
    %488 = arith.index_cast %487 : i32 to index
    %c0_240 = arith.constant 0 : index
    %489 = vector.load %arg7[%488, %c0_240] : memref<16x32xf32, #tpu.memory_space<vmem>>, vector<1x32xf32>
    %c1_241 = arith.constant 1 : index
    %c0_242 = arith.constant 0 : index
    %490 = vector.load %arg8[%c1_241, %c0_242] : memref<6x32xf32, #tpu.memory_space<vmem>>, vector<1x32xf32>
    tpu.vector_store %arg8[%c1_241, %c0_242], %489 {strides = array<i32>} : memref<6x32xf32, #tpu.memory_space<vmem>>, vector<1x32xf32>,
    %c34 = arith.constant 34 : index
    %491 = memref.load %arg0[%c34] : memref<38xi32, #tpu.memory_space<smem>>
    %492 = arith.index_cast %491 : i32 to index
    %c0_243 = arith.constant 0 : index
    %493 = vector.load %arg7[%492, %c0_243] : memref<16x32xf32, #tpu.memory_space<vmem>>, vector<1x32xf32>
    %c2_244 = arith.constant 2 : index
    %c0_245 = arith.constant 0 : index
    %494 = vector.load %arg8[%c2_244, %c0_245] : memref<6x32xf32, #tpu.memory_space<vmem>>, vector<1x32xf32>
    tpu.vector_store %arg8[%c2_244, %c0_245], %493 {strides = array<i32>} : memref<6x32xf32, #tpu.memory_space<vmem>>, vector<1x32xf32>,
    %c35 = arith.constant 35 : index
    %495 = memref.load %arg0[%c35] : memref<38xi32, #tpu.memory_space<smem>>
    %496 = arith.index_cast %495 : i32 to index
    %c0_246 = arith.constant 0 : index
    %497 = vector.load %arg7[%496, %c0_246] : memref<16x32xf32, #tpu.memory_space<vmem>>, vector<1x32xf32>
    %c3_247 = arith.constant 3 : index
    %c0_248 = arith.constant 0 : index
    %498 = vector.load %arg8[%c3_247, %c0_248] : memref<6x32xf32, #tpu.memory_space<vmem>>, vector<1x32xf32>
    tpu.vector_store %arg8[%c3_247, %c0_248], %497 {strides = array<i32>} : memref<6x32xf32, #tpu.memory_space<vmem>>, vector<1x32xf32>,
    %c36 = arith.constant 36 : index
    %499 = memref.load %arg0[%c36] : memref<38xi32, #tpu.memory_space<smem>>
    %500 = arith.index_cast %499 : i32 to index
    %c0_249 = arith.constant 0 : index
    %501 = vector.load %arg7[%500, %c0_249] : memref<16x32xf32, #tpu.memory_space<vmem>>, vector<1x32xf32>
    %c4_250 = arith.constant 4 : index
    %c0_251 = arith.constant 0 : index
    %502 = vector.load %arg8[%c4_250, %c0_251] : memref<6x32xf32, #tpu.memory_space<vmem>>, vector<1x32xf32>
    tpu.vector_store %arg8[%c4_250, %c0_251], %501 {strides = array<i32>} : memref<6x32xf32, #tpu.memory_space<vmem>>, vector<1x32xf32>,
    %c37 = arith.constant 37 : index
    %503 = memref.load %arg0[%c37] : memref<38xi32, #tpu.memory_space<smem>>
    %504 = arith.index_cast %503 : i32 to index
    %c0_252 = arith.constant 0 : index
    %505 = vector.load %arg7[%504, %c0_252] : memref<16x32xf32, #tpu.memory_space<vmem>>, vector<1x32xf32>
    %c5_253 = arith.constant 5 : index
    %c0_254 = arith.constant 0 : index
    %506 = vector.load %arg8[%c5_253, %c0_254] : memref<6x32xf32, #tpu.memory_space<vmem>>, vector<1x32xf32>
    tpu.vector_store %arg8[%c5_253, %c0_254], %505 {strides = array<i32>} : memref<6x32xf32, #tpu.memory_space<vmem>>, vector<1x32xf32>,
    %c0_255 = arith.constant 0 : index
    %c0_256 = arith.constant 0 : index
    %507 = vector.load %arg8[%c0_255, %c0_256] : memref<6x32xf32, #tpu.memory_space<vmem>>, vector<6x32xf32>
    %c84 = arith.constant 84 : index
    %c0_257 = arith.constant 0 : index
    %508 = vector.load %arg2[%c84, %c0_257] : memref<184x32xf32, #tpu.memory_space<vmem>>, vector<32x8xf32>
    %c116 = arith.constant 116 : index
    %c0_258 = arith.constant 0 : index
    %509 = vector.load %arg2[%c116, %c0_258] : memref<184x32xf32, #tpu.memory_space<vmem>>, vector<32x8xf32>
    %c148 = arith.constant 148 : index
    %c0_259 = arith.constant 0 : index
    %510 = vector.load %arg2[%c148, %c0_259] : memref<184x32xf32, #tpu.memory_space<vmem>>, vector<32x8xf32>
    %c180 = arith.constant 180 : index
    %c0_260 = arith.constant 0 : index
    %511 = vector.load %arg2[%c180, %c0_260] : memref<184x32xf32, #tpu.memory_space<vmem>>, vector<1x8xf32>
    %512 = vector.extract_strided_slice %507 {offsets = [0, 0], sizes = [2, 32], strides = [1, 1]} : vector<6x32xf32> to vector<2x32xf32>
    %cst_261 = arith.constant dense<0.000000e+00> : vector<2x8xf32>
    %513 = tpu.matmul %512, %508, %cst_261 {dimension_numbers = #tpu.dot_dimension_numbers<[1], [0], [0], [1], [0, 0, 1, 1], [], []>} : vector<2x32xf32>, vector<32x8xf32>, vector<2x8xf32> -> vector<2x8xf32>
    %514 = vector.extract_strided_slice %507 {offsets = [2, 0], sizes = [2, 32], strides = [1, 1]} : vector<6x32xf32> to vector<2x32xf32>
    %cst_262 = arith.constant dense<0.000000e+00> : vector<2x8xf32>
    %515 = tpu.matmul %514, %509, %cst_262 {dimension_numbers = #tpu.dot_dimension_numbers<[1], [0], [0], [1], [0, 0, 1, 1], [], []>} : vector<2x32xf32>, vector<32x8xf32>, vector<2x8xf32> -> vector<2x8xf32>
    %516 = arith.addf %513, %515 : vector<2x8xf32>
    %517 = vector.extract_strided_slice %507 {offsets = [4, 0], sizes = [2, 32], strides = [1, 1]} : vector<6x32xf32> to vector<2x32xf32>
    %cst_263 = arith.constant dense<0.000000e+00> : vector<2x8xf32>
    %518 = tpu.matmul %517, %510, %cst_263 {dimension_numbers = #tpu.dot_dimension_numbers<[1], [0], [0], [1], [0, 0, 1, 1], [], []>} : vector<2x32xf32>, vector<32x8xf32>, vector<2x8xf32> -> vector<2x8xf32>
    %519 = arith.addf %516, %518 : vector<2x8xf32>
    %520 = vector.broadcast %511 : vector<1x8xf32> to vector<2x8xf32>
    %521 = arith.addf %519, %520 : vector<2x8xf32>
    %c0_264 = arith.constant 0 : index
    %c0_265 = arith.constant 0 : index
    %522 = vector.load %arg5[%c0_264, %c0_265] : memref<2x8xf32, #tpu.memory_space<vmem>>, vector<2x8xf32>
    tpu.vector_store %arg5[%c0_264, %c0_265], %521 {strides = array<i32>} : memref<2x8xf32, #tpu.memory_space<vmem>>, vector<2x8xf32>,
    %c0_266 = arith.constant 0 : index
    %c8_267 = arith.constant 8 : index
    %523 = vector.load %arg1[%c0_266, %c8_267] : memref<2x16xf32, #tpu.memory_space<vmem>>, vector<2x8xf32>
    %cst_268 = arith.constant dense<0xFF800000> : vector<2xf32>
    %524 = vector.multi_reduction <maximumf>, %521, %cst_268 [1] : vector<2x8xf32> to vector<2xf32>
    %525 = vector.shape_cast %524 : vector<2xf32> to vector<2x1xf32>
    %526 = vector.broadcast %525 : vector<2x1xf32> to vector<2x8xf32>
    %527 = arith.subf %521, %526 : vector<2x8xf32>
    %528 = math.exp %527 : vector<2x8xf32>
    %cst_269 = arith.constant dense<0.000000e+00> : vector<2xf32>
    %529 = vector.multi_reduction <add>, %528, %cst_269 [1] : vector<2x8xf32> to vector<2xf32>
    %530 = vector.shape_cast %529 : vector<2xf32> to vector<2x1xf32>
    %531 = math.log %530 : vector<2x1xf32>
    %532 = arith.addf %531, %525 : vector<2x1xf32>
    %533 = arith.mulf %523, %521 : vector<2x8xf32>
    %cst_270 = arith.constant dense<0.000000e+00> : vector<2xf32>
    %534 = vector.multi_reduction <add>, %533, %cst_270 [1] : vector<2x8xf32> to vector<2xf32>
    %535 = vector.shape_cast %534 : vector<2xf32> to vector<2x1xf32>
    %536 = arith.subf %532, %535 : vector<2x1xf32>
    %537 = vector.shape_cast %536 : vector<2x1xf32> to vector<1x2x1xf32>
    %cst_271 = arith.constant dense<0.000000e+00> : vector<1xf32>
    %538 = vector.multi_reduction <add>, %537, %cst_271 [1, 2] : vector<1x2x1xf32> to vector<1xf32>
    %539 = vector.shape_cast %538 : vector<1xf32> to vector<1x1x1xf32>
    %540 = vector.extract %539[0, 0, 0] : f32 from vector<1x1x1xf32>
    %541 = vector.broadcast %540 : f32 to vector<1x1xf32>
    %cst_272 = arith.constant 2.000000e+00 : f32
    %542 = vector.broadcast %cst_272 : f32 to vector<1x1xf32>
    %543 = arith.divf %541, %542 : vector<1x1xf32>
    %c0_273 = arith.constant 0 : index
    %c0_274 = arith.constant 0 : index
    %544 = vector.load %arg6[%c0_273, %c0_274] : memref<1x1xf32, #tpu.memory_space<vmem>>, vector<1x1xf32>
    tpu.vector_store %arg6[%c0_273, %c0_274], %543 {strides = array<i32>} : memref<1x1xf32, #tpu.memory_space<vmem>>, vector<1x1xf32>,
    return
  }
}

</mosaic_0001>

<bundles_post_ra>
// kernel: re_bert_forward.1
= control target key start
LH: loop header
LB: loop body
LE: loop exit
PB: predicated region body
PF: predicated region fallthrough
CT: control target
= control target key end

     0   :  { %12 = vsyncpa [#allocation6], 0  ;;  %s4144_s0 = inlined_call_operand.vmem [shape: s32[38], index: 0, kind: input, shape index: {}]   ;;  %s4145_s1 = inlined_call_operand.vmem [shape: f32[2,16], index: 1, kind: input, shape index: {}]   ;;  %s4146_s2 = inlined_call_operand.vmem [shape: f32[184,32], index: 2, kind: input, shape index: {}]   ;;  %s4147_s3 = inlined_call_operand.vmem [shape: f32[2,128,128], index: 3, kind: input, shape index: {}]   ;;  %s4148_s4 = inlined_call_operand.vmem [shape: f32[2,8,128], index: 4, kind: input, shape index: {}]   ;;  %s4149_s5 = inlined_call_operand.hbm [shape: f32[2,8], index: 5, kind: output, shape index: {0}]   ;;  %s4150_s6 = inlined_call_operand.hbm [shape: f32[1,1], index: 6, kind: output, shape index: {1}]  }
   0x1   :  { %13 = vsyncpa [#allocation5], 0 }
   0x2   :  { %14 = vsyncpa [#allocation9], 0  ;;  %s21_s23 = sshll.u32 %s4144_s0, 4  ;;  %s22_s23 = int_to_ptr.vmem [resolvable:$true] %s21_s23 }
   0x3   :  { %s3372_s24 = scalar_lea.vmem %s22_s23, 16  ;;  %p3377_p1 = scmp.lt.s32.totalorder %s22_s23, %s22_s23 }
   0x4   :  { %p3373_p0 = scmp.ne.s32.totalorder %s22_s23, %s3372_s24  ;;  %p3378_p2 = scmp.lt.s32.totalorder %s3372_s24, %s3372_s24 }
   0x6   :  { %p3379_p3 = por %p3378_p2, %p3377_p1 }
   0x8   :  { %p3380_p4 = pnand %p3379_p3, %p3373_p0 }
   0xa   :  { %3383 = shalt.err (!%p3380_p4)
}
   0xb   :  { %s3434_s25 = smov [#allocation4]  }
   0xc   :  { %24 = dma.vmem_to_smem %s22_s23, 16, %s3434_s25, [#allocation6]  }
   0xd   :  { %3428 = dma.done.wait [#allocation6], 16  }
   0xe   :  { %3429 = vsyncadd [#allocation6], 4294967280 }
   0xf   :  { %36 = sfence }
  0x10   :  { %s37_s26 = sld [smem:[#allocation4]]  ;;  %s2791_s28 = sld [smem:[#allocation4 + $0x1]]  ;;  %v41_v0 = vld [vmem:[%s4146_s2 + $0x40] sm:$0x1]  ;;  %vm47_vm0 = vcmask 253952   ;;  %vm218_vm1 = vcmask 261120  }
  0x11   :  { %s2789_s27 = sld [smem:[#allocation4 + $0x10]]  ;;  %s2792_s29 = sld [smem:[#allocation4 + $0x11]]  ;;  %v53_v1 = vld [vmem:[%s4146_s2 + $0x41] sm:$0x1]  ;;  %v64_v4 = vld [vmem:[%s4146_s2 + $0x42] sm:$0x1] }
  0x12   :  { %s2794_s30 = sld [smem:[#allocation4 + $0x2]]  ;;  %s3486_s0 = sld [smem:[#allocation4 + $0x3]]  ;;  %v75_v8 = vld [vmem:[%s4146_s2 + $0x43] sm:$0x1]  ;;  %v86_v12 = vld [vmem:[%s4146_s2 + $0x44] sm:$0x1] }
  0x13   :  { %s2795_s7 = sld [smem:[#allocation4 + $0x12]]  ;;  %s3488_s8 = sld [smem:[#allocation4 + $0x13]]  ;;  %v97_v17 = vld [vmem:[%s4146_s2 + $0x45] sm:$0x1]  ;;  %v108_v30 = vld [vmem:[%s4146_s2 + $0x46] sm:$0x1] }
  0x14   :  { %s3490_s9 = sld [smem:[#allocation4 + $0x4]]  ;;  %s3497_s13 = sld [smem:[#allocation4 + $0x5]]  ;;  %v119_v31 = vld [vmem:[%s4146_s2 + $0x47] sm:$0x1]  ;;  %v130_v33 = vld [vmem:[%s4146_s2 + $0x40] sm:$0x1] }
  0x15   :  { %s3492_s10 = sld [smem:[#allocation4 + $0x14]]  ;;  %s3499_s14 = sld [smem:[#allocation4 + $0x15]]  ;;  %v141_v37 = vld [vmem:[%s4146_s2 + $0x41] sm:$0x1]  ;;  %v152_v41 = vld [vmem:[%s4146_s2 + $0x42] sm:$0x1] }
  0x16   :  { %s39_s17 = scalar_lea.vmem %s4146_s2, %s37_s26  ;;  %s51_s25 = scalar_lea.vmem %s4146_s2, %s2791_s28  ;;  %v163_v46 = vld [vmem:[%s4146_s2 + $0x43] sm:$0x1]  ;;  %v174_v60 = vld [vmem:[%s4146_s2 + $0x44] sm:$0x1]  ;;  %v185_v61 = vld [vmem:[%s4146_s2 + $0x45] sm:$0x1] }
  0x17   :  { %s2736_s20 = scalar_lea.vmem %s4146_s2, %s2789_s27  ;;  %v40_v2 = vld [vmem:[%s39_s17] sm:$0x1]  ;;  %s2739_s26 = scalar_lea.vmem %s4146_s2, %s2792_s29  ;;  %v196_v63 = vld [vmem:[%s4146_s2 + $0x46] sm:$0x1]  ;;  %vm3436_vm2 = vmmov 0   ;;  %vm373_vm3 = vcmask 130048  }
  0x18   :  { %v2790_v3 = vld [vmem:[%s2736_s20 + $0x50] sm:$0x1]  ;;  %v42_v5 = vadd.f32 %v41_v0, %v40_v2  ;;  %v52_v6 = vld [vmem:[%s51_s25] sm:$0x1]  ;;  %s62_s18 = scalar_lea.vmem %s4146_s2, %s2794_s30  ;;  %s73_s24 = scalar_lea.vmem %s4146_s2, %s3486_s0  ;;  %v207_v0 = vld [vmem:[%s4146_s2 + $0x47] sm:$0x1] }
  0x19   :  { %v2793_v7 = vld [vmem:[%s2739_s26 + $0x50] sm:$0x1]  ;;  %s2742_s28 = scalar_lea.vmem %s4146_s2, %s2795_s7  ;;  %v54_v9 = vadd.f32 %v53_v1, %v52_v6  ;;  %v63_v10 = vld [vmem:[%s62_s18] sm:$0x1]  ;;  %s2745_s30 = scalar_lea.vmem %s4146_s2, %s3488_s8  ;;  %vm562_vm4 = vcmask 64512   ;;  %vm1224_vm5 = vcmask 523264  }
  0x1a   :  { %v2796_v11 = vld [vmem:[%s2742_s28 + $0x50] sm:$0x1]  ;;  %v46_v13 = vadd.f32 %v2790_v3, %v42_v5  ;;  %v65_v14 = vadd.f32 %v64_v4, %v63_v10  ;;  %v74_v15 = vld [vmem:[%s73_s24] sm:$0x1]  ;;  %s84_s16 = scalar_lea.vmem %s4146_s2, %s3490_s9  ;;  %s95_s28 = scalar_lea.vmem %s4146_s2, %s3497_s13  ;;  %vm2662_vm6 = vcmask 58368   ;;  %vm2690_vm7 = vcmask 1024  }
  0x1b   :  { %v2799_v16 = vld [vmem:[%s2745_s30 + $0x50] sm:$0x1]  ;;  %s2748_s0 = scalar_lea.vmem %s4146_s2, %s3492_s10  ;;  %v58_v18 = vadd.f32 %v2793_v7, %v54_v9  ;;  %v76_v19 = vadd.f32 %v75_v8, %v74_v15  ;;  %v85_v20 = vld [vmem:[%s84_s16] sm:$0x1]  ;;  %s2751_s9 = scalar_lea.vmem %s4146_s2, %s3499_s14 }
  0x1c   :  { %v2802_v21 = vld [vmem:[%s2748_s0 + $0x50] sm:$0x1]  ;;  %48 = vst.msk [vmem:[#allocation2] sm:$0x1] %vm47_vm0, %v46_v13  ;;  %v69_v22 = vadd.f32 %v2796_v11, %v65_v14  ;;  %v87_v23 = vadd.f32 %v86_v12, %v85_v20  ;;  %v96_v24 = vld [vmem:[%s95_s28] sm:$0x1] }
  0x1d   :  { %v2805_v25 = vld [vmem:[%s2751_s9 + $0x50] sm:$0x1]  ;;  %s2806_s10 = sld [smem:[#allocation4 + $0x6]]  ;;  %59 = vst.msk [vmem:[#allocation2 + $0x1] sm:$0x1] %vm47_vm0, %v58_v18  ;;  %v80_v26 = vadd.f32 %v2799_v16, %v76_v19  ;;  %v98_v27 = vadd.f32 %v97_v17, %v96_v24  ;;  %s2809_s23 = sld [smem:[#allocation4 + $0x7]] }
  0x1e   :  { %s2807_s29 = sld [smem:[#allocation4 + $0x16]]  ;;  %70 = vst.msk [vmem:[#allocation2 + $0x2] sm:$0x1] %vm47_vm0, %v69_v22  ;;  %v91_v28 = vadd.f32 %v2802_v21, %v87_v23  ;;  %s2810_s13 = sld [smem:[#allocation4 + $0x17]] }
  0x1f   :  { %s2812_s24 = sld [smem:[#allocation4 + $0x8]]  ;;  %81 = vst.msk [vmem:[#allocation2 + $0x3] sm:$0x1] %vm47_vm0, %v80_v26  ;;  %v102_v29 = vadd.f32 %v2805_v25, %v98_v27  ;;  %s3564_s25 = sld [smem:[#allocation4 + $0x9]] }
  0x20   :  { %s3562_s14 = sld [smem:[#allocation4 + $0x18]]  ;;  %92 = vst.msk [vmem:[#allocation2 + $0x4] sm:$0x1] %vm47_vm0, %v91_v28  ;;  %s3567_s11 = sld [smem:[#allocation4 + $0x19]] }
  0x21   :  { %s3569_s30 = sld [smem:[#allocation4 + $0xa]]  ;;  %103 = vst.msk [vmem:[#allocation2 + $0x5] sm:$0x1] %vm47_vm0, %v102_v29  ;;  %s3577_s15 = sld [smem:[#allocation4 + $0xb]] }
  0x22   :  { %s3575_s7 = sld [smem:[#allocation4 + $0x1a]]  ;;  %s3585_s19 = sld [smem:[#allocation4 + $0x1b]] }
  0x23   :  { %s106_s17 = scalar_lea.vmem %s4146_s2, %s2806_s10  ;;  %s117_s9 = scalar_lea.vmem %s4146_s2, %s2809_s23 }
  0x24   :  { %v107_v32 = vld [vmem:[%s106_s17] sm:$0x1]  ;;  %s2754_s28 = scalar_lea.vmem %s4146_s2, %s2807_s29  ;;  %s2757_s27 = scalar_lea.vmem %s4146_s2, %s2810_s13 }
  0x25   :  { %v109_v34 = vadd.f32 %v108_v30, %v107_v32  ;;  %v2808_v35 = vld [vmem:[%s2754_s28 + $0x50] sm:$0x1]  ;;  %v118_v36 = vld [vmem:[%s117_s9] sm:$0x1]  ;;  %s128_s29 = scalar_lea.vmem %s4146_s2, %s2812_s24  ;;  %s139_s13 = scalar_lea.vmem %s4146_s2, %s3564_s25 }
  0x26   :  { %v120_v38 = vadd.f32 %v119_v31, %v118_v36  ;;  %v2811_v39 = vld [vmem:[%s2757_s27 + $0x50] sm:$0x1]  ;;  %v129_v40 = vld [vmem:[%s128_s29] sm:$0x1]  ;;  %s2760_s28 = scalar_lea.vmem %s4146_s2, %s3562_s14  ;;  %s2763_s10 = scalar_lea.vmem %s4146_s2, %s3567_s11  ;;  %v262_v31 = vld [vmem:[%s4147_s3 + $0x8] sm:$0xff] }
  0x27   :  { %v113_v42 = vadd.f32 %v2808_v35, %v109_v34  ;;  %v131_v43 = vadd.f32 %v130_v33, %v129_v40  ;;  %v2814_v44 = vld [vmem:[%s2760_s28 + $0x50] sm:$0x1]  ;;  %v140_v45 = vld [vmem:[%s139_s13] sm:$0x1]  ;;  %s150_s14 = scalar_lea.vmem %s4146_s2, %s3569_s30  ;;  %s161_s11 = scalar_lea.vmem %s4146_s2, %s3577_s15  ;;  %v264_v34 = vld [vmem:[%s4147_s3 + $0x18] sm:$0xff] }
  0x28   :  { %v124_v47 = vadd.f32 %v2811_v39, %v120_v38  ;;  %v142_v48 = vadd.f32 %v141_v37, %v140_v45  ;;  %v2817_v49 = vld [vmem:[%s2763_s10 + $0x50] sm:$0x1]  ;;  %v151_v50 = vld [vmem:[%s150_s14] sm:$0x1]  ;;  %s2766_s18 = scalar_lea.vmem %s4146_s2, %s3575_s7  ;;  %s2769_s28 = scalar_lea.vmem %s4146_s2, %s3585_s19  ;;  %v2837_v45 = vld [vmem:[%s4146_s2 + $0x53] ss:$0 sm:$0xff] }
  0x29   :  { %114 = vst.msk [vmem:[#allocation2 + $0x6] sm:$0x1] %vm47_vm0, %v113_v42  ;;  %v135_v51 = vadd.f32 %v2814_v44, %v131_v43  ;;  %v153_v52 = vadd.f32 %v152_v41, %v151_v50  ;;  %v2820_v53 = vld [vmem:[%s2766_s18 + $0x50] sm:$0x1]  ;;  %v162_v54 = vld [vmem:[%s161_s11] sm:$0x1] }
  0x2a   :  { %s2824_s21 = sld [smem:[#allocation4 + $0xc]]  ;;  %125 = vst.msk [vmem:[#allocation2 + $0x7] sm:$0x1] %vm47_vm0, %v124_v47  ;;  %v146_v55 = vadd.f32 %v2817_v49, %v142_v48  ;;  %v164_v56 = vadd.f32 %v163_v46, %v162_v54  ;;  %v2823_v57 = vld [vmem:[%s2769_s28 + $0x50] sm:$0x1]  ;;  %s2827_s22 = sld [smem:[#allocation4 + $0xd]] }
  0x2b   :  { %s2825_s7 = sld [smem:[#allocation4 + $0x1c]]  ;;  %136 = vst.msk [vmem:[#allocation2 + $0x8] sm:$0x1] %vm47_vm0, %v135_v51  ;;  %v157_v58 = vadd.f32 %v2820_v53, %v153_v52  ;;  %s2828_s15 = sld [smem:[#allocation4 + $0x1d]]  ;;  %v261_v30 = vld [vmem:[%s4147_s3] sm:$0xff]  ;;  %v263_v32 = vld [vmem:[%s4147_s3 + $0x10] sm:$0xff] }
  0x2c   :  { %s2830_s13 = sld [smem:[#allocation4 + $0xe]]  ;;  %147 = vst.msk [vmem:[#allocation2 + $0x9] sm:$0x1] %vm47_vm0, %v146_v55  ;;  %v168_v59 = vadd.f32 %v2823_v57, %v164_v56  ;;  %s3645_s12 = sld [smem:[#allocation4 + $0xf]]  ;;  %v3210_v33 = vpack.c.bf16 %v262_v31, %v261_v30  ;;  %v3214_v35 = vpack.c.bf16 %v264_v34, %v263_v32  ;;  %v2836_v42 = vld [vmem:[%s4146_s2 + $0x52] ss:$0 sm:$0xff] }
  0x2d   :  { %s3643_s9 = sld [smem:[#allocation4 + $0x1e]]  ;;  %158 = vst.msk [vmem:[#allocation2 + $0xa] sm:$0x1] %vm47_vm0, %v157_v58  ;;  %s3648_s19 = sld [smem:[#allocation4 + $0x1f]]  ;;  %v3435_v52 = vmov 0.0  }
  0x2e   :  { %169 = vst.msk [vmem:[#allocation2 + $0xb] sm:$0x1] %vm47_vm0, %v168_v59  ;;  %3211 = vmatprep.subr.bf16.mxu0 %v3210_v33  ;;  %3026 = vmatprep.subr.mxu1 %v3435_v52  ;;  %v2838_v53 = vld [vmem:[%s4148_s4] ss:$0 sm:$0xff]  ;;  %s3437_s10 = smov 96   ;;  %s3439_s16 = smov 112  }
  0x2f   :  { %3213 = vmatpush3.bf16.msra.mxu0 %v3210_v33  ;;  %3028 = vmatprep.mubr.msk.f32.mxu1 %vm3436_vm2, %v3435_v52  ;;  %s3441_s17 = smov 32   ;;  %s3442_s0 = smov 64  }
  0x30   :  { %s172_s27 = scalar_lea.vmem %s4146_s2, %s2824_s21  ;;  %s183_s23 = scalar_lea.vmem %s4146_s2, %s2827_s22  ;;  %3215 = vmatprep.subr.bf16.mxu0 %v3214_v35 }
  0x31   :  { %v173_v62 = vld [vmem:[%s172_s27] sm:$0x1]  ;;  %s2772_s29 = scalar_lea.vmem %s4146_s2, %s2825_s7  ;;  %s2775_s7 = scalar_lea.vmem %s4146_s2, %s2828_s15 }
  0x32   :  { %v214_v1 = vld [vmem:[#allocation2] sm:$0xff]  ;;  %v175_v2 = vadd.f32 %v174_v60, %v173_v62  ;;  %v2826_v3 = vld [vmem:[%s2772_s29 + $0x50] sm:$0x1]  ;;  %s194_s22 = scalar_lea.vmem %s4146_s2, %s2830_s13  ;;  %s205_s25 = scalar_lea.vmem %s4146_s2, %s3645_s12 }
  0x33   :  { %v184_v4 = vld [vmem:[%s183_s23] sm:$0x1]  ;;  %v219_v5 = vsel %vm218_vm1, %v214_v1, 0.0  ;;  %v2829_v7 = vld [vmem:[%s2775_s7 + $0x50] sm:$0x1]  ;;  %s2778_s14 = scalar_lea.vmem %s4146_s2, %s3643_s9  ;;  %s2781_s29 = scalar_lea.vmem %s4146_s2, %s3648_s19  ;;  %3217 = vmatpush3.bf16.msra.mxu0 %v3214_v35 }
  0x34   :  { %v186_v6 = vadd.f32 %v185_v61, %v184_v4  ;;  %v195_v8 = vld [vmem:[%s194_s22] sm:$0x1]  ;;  %220 = vadd.xlane.f32.xlu0 %v219_v5  ;;  %v179_v9 = vadd.f32 %v2826_v3, %v175_v2  ;;  %v2832_v11 = vld [vmem:[%s2778_s14 + $0x50] sm:$0x1]  ;;  %3036 = vmatprep.subr.mxu0 %v3435_v52  ;;  %s3438_s22 = smov 80   ;;  %v531_v2 = vlaneseq  ;;  %s2916_s8 = sld [smem:[#allocation4 + $0x22]] }
  0x35   :  { %v197_v10 = vadd.f32 %v196_v63, %v195_v8  ;;  %v206_v12 = vld [vmem:[%s205_s25] sm:$0x1]  ;;  %v2835_v15 = vld [vmem:[%s2781_s29 + $0x50] sm:$0x1]  ;;  %s2917_s23 = sld [smem:[#allocation4 + $0x23]]  ;;  %s2919_s11 = sld [smem:[#allocation4 + $0x25]] }
  0x36   :  { %v190_v13 = vadd.f32 %v2829_v7, %v186_v6  ;;  %v208_v14 = vadd.f32 %v207_v0, %v206_v12  ;;  %180 = vst.msk [vmem:[#allocation2 + $0xc] sm:$0x1] %vm47_vm0, %v179_v9  ;;  %v3440_v0 = vmov 1966171168   ;;  %v258_v3 = vld [vmem:[%s4145_s1] sm:$0x3] }
  0x37   :  { %v201_v16 = vadd.f32 %v2832_v11, %v197_v10  ;;  %v259_v4 = vsub.f32 1.0, %v258_v3  ;;  %v532_v6 = vshrl.u32 %v531_v2, 7  ;;  %s3444_s19 = smov 8  }
  0x38   :  { %191 = vst.msk [vmem:[#allocation2 + $0xd] sm:$0x1] %vm47_vm0, %v190_v13  ;;  %v212_v17 = vadd.f32 %v2835_v15, %v208_v14 }
  0x39   :  { %202 = vst.msk [vmem:[#allocation2 + $0xe] sm:$0x1] %vm47_vm0, %v201_v16  ;;  %v260_v7 = vmul.f32 -1e+09, %v259_v4  ;;  %v552_v15 = vsub.s32 0, %v532_v6 }
  0x3a   :  { %213 = vst.msk [vmem:[#allocation2 + $0xf] sm:$0x1] %vm47_vm0, %v212_v17 }
  0x3b   :  { %s2412_s28 = scalar_lea.vmem [#allocation2], %s2917_s23  ;;  %s2420_s24 = scalar_lea.vmem [#allocation2], %s2919_s11 }
  0x41   :  { %v215_v18 = vld [vmem:[#allocation2 + $0x8] sm:$0xff] }
  0x42   :  { %v222_v19 = vsel %vm218_vm1, %v215_v18, 0.0 }
  0x43   :  { %223 = vadd.xlane.f32.xlu0 %v222_v19 }
  0xc1   :  { %v221_v20 = vpop.xlane.xlu0 %220 }
  0xc2   :  { %v226_v21 = vmul.f32 0.03125, %v221_v20 }
  0xc4   :  { %v228_v22 = vsub.f32 %v214_v1, %v226_v21  ;;  %v529_v1 = vunpack.c.l.s4 %v3440_v0 }
  0xc6   :  { %v230_v23 = vmul.f32 %v228_v22, %v228_v22  ;;  %v530_v5 = vunpack.c.0.s8 %v529_v1 }
  0xc8   :  { %v232_v24 = vsel %vm218_vm1, %v230_v23, 0.0  ;;  %v533_v8 = vsub.s32 %v530_v5, %v532_v6 }
  0xc9   :  { %233 = vadd.xlane.f32.xlu1 %v232_v24 }
  0xca   :  { %v534_v9 = vrot.slane %v260_v7, %v533_v8 }
  0xcc   :  { %v535_v12 = vcombine.high %v534_v9, %v534_v9  ;;  %v542_v14 = vrot.slane %v534_v9, %v533_v8 }
  0xce   :  { %v549_v17 = vrot.slane %v535_v12, %v533_v8  ;;  %v3774_v23 = vrot.slane %v542_v14, %v552_v15 }
  0xd0   :  { %v224_v25 = vpop.xlane.xlu0 %223 }
  0xd1   :  { %v227_v26 = vmul.f32 0.03125, %v224_v25 }
  0xd3   :  { %v229_v27 = vsub.f32 %v215_v18, %v227_v26  ;;  %v3776_v26 = vrot.slane %v549_v17, %v552_v15 }
  0xd5   :  { %v231_v28 = vmul.f32 %v229_v27, %v229_v27 }
  0xd7   :  { %v235_v29 = vsel %vm218_vm1, %v231_v28, 0.0 }
  0xd8   :  { %236 = vadd.xlane.f32.xlu1 %v235_v29 }
 0x156   :  { %v234_v36 = vpop.xlane.xlu1 %233 }
 0x157   :  { %v238_v37 = vmul.f32 0.03125, %v234_v36 }
 0x159   :  { %v240_v38 = vadd.f32 1e-12, %v238_v37 }
 0x15b   :  { %3308 = vrsqrt.f32 %v240_v38 }
 0x165   :  { %v237_v39 = vpop.xlane.xlu1 %236  ;;  %v3309_v40 = vpop.eup %3308 }
 0x166   :  { %v239_v41 = vmul.f32 0.03125, %v237_v39  ;;  %v244_v43 = vmul.f32 %v3309_v40, %v228_v22 }
 0x168   :  { %v241_v44 = vadd.f32 1e-12, %v239_v41  ;;  %v250_v46 = vmul.f32 %v2836_v42, %v244_v43 }
 0x16a   :  { %3310 = vrsqrt.f32 %v241_v44  ;;  %v3716_v47 = vadd.f32 %v2837_v45, %v250_v46 }
 0x16c   :  { %3023 = vmatprep.mubr.msk.f32.mxu0 %vm218_vm1, %v3716_v47 }
 0x174   :  { %v3311_v48 = vpop.eup %3310 }
 0x175   :  { %v245_v49 = vmul.f32 %v3311_v48, %v229_v27 }
 0x177   :  { %v251_v50 = vmul.f32 %v2836_v42, %v245_v49 }
 0x179   :  { %v3720_v51 = vadd.f32 %v2837_v45, %v251_v50 }
 0x17b   :  { %3024 = vmatmul.mubr.msk.f32.vlgmr.msra.gmra.mrb[0].mxu0 %vm218_vm1, %v3720_v51 }
 0x17c   :  { %3038 = vmatprep.mubr.msk.f32.mxu0 %vm3436_vm2, %v3435_v52 }
 0x24e   :  { %v3025_v54 = vpop.f32.mrb[0].mxu0 }
 0x24f   :  { %v3733_v55 = vadd.f32 %v3025_v54, %v2838_v53  ;;  %v361_v56 = vpop.f32.mrb[1].mxu0 }
 0x250   :  { %v3735_v57 = vadd.f32 %v2838_v53, %v361_v56 }
 0x251   :  { %449 = vrot.lane.b32.xlu1 %v3733_v55, %s3437_s10 }
 0x252   :  { %371 = vrot.lane.b32.xlu0 %v3735_v57, %s3437_s10 }
 0x255   :  { %665 = vrot.lane.b32.xlu1 %v3733_v55, %s3438_s22 }
 0x256   :  { %585 = vrot.lane.b32.xlu0 %v3735_v57, %s3439_s16 }
 0x259   :  { %587 = vrot.lane.b32.xlu1 %v3735_v57, %s3438_s22 }
 0x25d   :  { %663 = vrot.lane.b32.xlu1 %v3733_v55, %s3439_s16 }
 0x2c3   :  { %v450_v58 = vpop.permute.xlu1 %449 }
 0x2c4   :  { %v372_v59 = vpop.permute.xlu0 %371 }
 0x2c5   :  { %3027 = vmatpush3.xpose.msk.msra.mxu1 %vm373_vm3, %v372_v59 }
 0x2c6   :  { %3031 = vmatprep.subr.mxu1 %v3435_v52 }
 0x2c7   :  { %v666_v60 = vpop.permute.xlu1 %665 }
 0x2c8   :  { %3029 = vmatmul.mubr.msk.f32.vlgmr.msra.gmra.mrb[0].mxu1 %vm373_vm3, %v3735_v57  ;;  %v586_v62 = vpop.permute.xlu0 %585 }
 0x2c9   :  { %3032 = vmatpush3.xpose.msk.msra.mxu1 %vm373_vm3, %v450_v58  ;;  %3033 = vmatprep.mubr.msk.f32.mxu1 %vm3436_vm2, %v3435_v52 }
 0x2ca   :  { %3041 = vmatprep.subr.mxu1 %v3435_v52 }
 0x2cb   :  { %v588_v61 = vpop.permute.xlu1 %587 }
 0x2cc   :  { %3034 = vmatmul.mubr.msk.f32.vlgmr.msra.gmra.mrb[2].mxu1 %vm373_vm3, %v3733_v55  ;;  %3037 = vmatpush3.xpose.msk.msra.mxu0 %vm373_vm3, %v588_v61 }
 0x2cd   :  { %3042 = vmatpush3.xpose.msk.msra.mxu1 %vm373_vm3, %v666_v60  ;;  %3043 = vmatprep.mubr.msk.f32.mxu1 %vm3436_vm2, %v3435_v52 }
 0x2ce   :  { %3051 = vmatprep.subr.mxu1 %v3435_v52  ;;  %3046 = vmatprep.subr.mxu0 %v3435_v52 }
 0x2cf   :  { %v664_v63 = vpop.permute.xlu1 %663  ;;  %3039 = vmatmul.mubr.msk.f32.vlgmr.msra.gmra.mrb[2].mxu0 %vm373_vm3, %v586_v62 }
 0x2d0   :  { %3044 = vmatmul.mubr.msk.f32.vlgmr.msra.gmra.mrb[4].mxu1 %vm373_vm3, %v664_v63  ;;  %3048 = vmatprep.mubr.msk.f32.mxu0 %vm3436_vm2, %v3435_v52 }
 0x2d1   :  { %3053 = vmatprep.mubr.msk.f32.mxu1 %vm3436_vm2, %v3435_v52 }
 0x39b   :  { %v444_v10 = vpop.f32.mrb[0].mxu1 }
 0x39c   :  { %v3030_v11 = vpop.f32.mrb[1].mxu1  ;;  %v525_v19 = vmul.f32 0.25, %v444_v10 }
 0x39e   :  { %v560_v31 = vadd.f32 %v3774_v23, %v525_v19 }
 0x39f   :  { %v521_v13 = vpop.f32.mrb[2].mxu1 }
 0x3a0   :  { %v3035_v16 = vpop.f32.mrb[3].mxu1  ;;  %v526_v29 = vmul.f32 0.25, %v521_v13  ;;  %v563_v33 = vsel %vm562_vm4, %v560_v31, -inf  ;;  %v2853_v13 = vld [vmem:[%s4148_s4 + $0x1] ss:$0 sm:$0xff] }
 0x3a2   :  { %v659_v18 = vpop.f32.mrb[2].mxu0  ;;  %v561_v34 = vadd.f32 %v3776_v26, %v526_v29 }
 0x3a3   :  { %v741_v20 = vmul.f32 0.25, %v659_v18  ;;  %v3040_v21 = vpop.f32.mrb[3].mxu0  ;;  %v737_v22 = vpop.f32.mrb[4].mxu1 }
 0x3a4   :  { %v742_v24 = vmul.f32 0.25, %v737_v22  ;;  %v3045_v25 = vpop.f32.mrb[5].mxu1  ;;  %v566_v35 = vsel %vm562_vm4, %v561_v34, -inf }
 0x3a5   :  { %v743_v27 = vadd.f32 %v741_v20, %v3774_v23 }
 0x3a6   :  { %v744_v28 = vadd.f32 %v742_v24, %v3776_v26 }
 0x3a7   :  { %v745_v30 = vsel %vm562_vm4, %v743_v27, -inf }
 0x3a8   :  { %746 = vmax.xlane.f32.xlu0 %v745_v30  ;;  %v748_v32 = vsel %vm562_vm4, %v744_v28, -inf }
 0x3a9   :  { %749 = vmax.xlane.f32.xlu1 %v748_v32 }
 0x3ac   :  { %564 = vmax.xlane.f32.xlu0 %v563_v33 }
 0x3b0   :  { %567 = vmax.xlane.f32.xlu0 %v566_v35 }
 0x3ba   :  { %843 = vrot.lane.b32.xlu1 %v3733_v55, %s3441_s17 }
 0x3be   :  { %919 = vrot.lane.b32.xlu1 %v3735_v57, %s3442_s0 }
 0x435   :  { %v747_v36 = vpop.xlane.xlu0 %746 }
 0x436   :  { %v751_v37 = vsub.f32 %v743_v27, %v747_v36  ;;  %v750_v38 = vpop.xlane.xlu1 %749 }
 0x437   :  { %v752_v43 = vsub.f32 %v744_v28, %v750_v38 }
 0x438   :  { %v753_v39 = vmul.f32 1.442695, %v751_v37 }
 0x439   :  { %v565_v40 = vpop.xlane.xlu0 %564  ;;  %v755_v48 = vmul.f32 1.442695, %v752_v43 }
 0x43a   :  { %3312 = vpow2.f32 %v753_v39  ;;  %v569_v41 = vsub.f32 %v560_v31, %v565_v40  ;;  %v844_v42 = vpop.permute.xlu1 %843  ;;  %v266_v39 = vld [vmem:[%s4147_s3 + $0x28] sm:$0xff] }
 0x43b   :  { %3052 = vmatpush3.msra.mxu1 %v844_v42  ;;  %v268_v42 = vld [vmem:[%s4147_s3 + $0x38] sm:$0xff] }
 0x43c   :  { %v571_v44 = vmul.f32 1.442695, %v569_v41  ;;  %3061 = vmatprep.subr.mxu1 %v3435_v52  ;;  %v267_v41 = vld [vmem:[%s4147_s3 + $0x30] sm:$0xff] }
 0x43d   :  { %v568_v45 = vpop.xlane.xlu0 %567  ;;  %v3222_v43 = vpack.c.bf16 %v268_v42, %v267_v41 }
 0x43e   :  { %3314 = vpow2.f32 %v571_v44  ;;  %v570_v46 = vsub.f32 %v561_v34, %v568_v45  ;;  %v920_v63 = vpop.permute.xlu1 %919 }
 0x440   :  { %v573_v49 = vmul.f32 1.442695, %v570_v46 }
 0x442   :  { %3316 = vpow2.f32 %v573_v49 }
 0x443   :  { %3318 = vpow2.f32 %v755_v48 }
 0x444   :  { %v3313_v50 = vpop.eup %3312 }
 0x445   :  { %v757_v53 = vsel %vm562_vm4, %v3313_v50, 0.0 }
 0x446   :  { %758 = vadd.xlane.f32.xlu0 %v757_v53 }
 0x448   :  { %v3315_v54 = vpop.eup %3314 }
 0x449   :  { %v575_v56 = vsel %vm562_vm4, %v3315_v54, 0.0 }
 0x44a   :  { %576 = vadd.xlane.f32.xlu0 %v575_v56 }
 0x44c   :  { %v3317_v58 = vpop.eup %3316 }
 0x44d   :  { %v578_v59 = vsel %vm562_vm4, %v3317_v58, 0.0  ;;  %v3319_v60 = vpop.eup %3318 }
 0x44e   :  { %579 = vadd.xlane.f32.xlu1 %v578_v59  ;;  %v760_v61 = vsel %vm562_vm4, %v3319_v60, 0.0 }
 0x452   :  { %761 = vadd.xlane.f32.xlu1 %v760_v61 }
 0x460   :  { %767 = vrot.lane.b32.xlu0 %v3735_v57, %s3441_s17 }
 0x463   :  { %995 = vrot.lane.b32.xlu1 %v3733_v55, %s3442_s0 }
 0x4d3   :  { %v759_v62 = vpop.xlane.xlu0 %758 }
 0x4d4   :  { %3320 = vrcp.f32 %v759_v62 }
 0x4d7   :  { %v577_v0 = vpop.xlane.xlu0 %576 }
 0x4d8   :  { %3322 = vrcp.f32 %v577_v0 }
 0x4db   :  { %v580_v1 = vpop.xlane.xlu1 %579  ;;  %v768_v2 = vpop.permute.xlu0 %767 }
 0x4dc   :  { %3047 = vmatpush3.msra.mxu0 %v768_v2  ;;  %v270_v2 = vld [vmem:[%s4147_s3 + $0x48] sm:$0xff] }
 0x4dd   :  { %3056 = vmatprep.subr.mxu0 %v3435_v52 }
 0x4de   :  { %v3321_v3 = vpop.eup %3320 }
 0x4df   :  { %v764_v4 = vmul.f32 %v3321_v3, %v3313_v50  ;;  %v762_v5 = vpop.xlane.xlu1 %761 }
 0x4e0   :  { %3324 = vrcp.f32 %v762_v5  ;;  %v272_v5 = vld [vmem:[%s4147_s3 + $0x58] sm:$0xff] }
 0x4e1   :  { %3049 = vmatmul.mubr.msk.f32.vlgmr.msra.gmra.mrb[4].mxu0 %vm562_vm4, %v764_v4  ;;  %3326 = vrcp.f32 %v580_v1  ;;  %v269_v1 = vld [vmem:[%s4147_s3 + $0x40] sm:$0xff]  ;;  %v271_v4 = vld [vmem:[%s4147_s3 + $0x50] sm:$0xff] }
 0x4e2   :  { %v3323_v57 = vpop.eup %3322  ;;  %3057 = vmatpush3.msra.mxu0 %v920_v63  ;;  %3058 = vmatprep.mubr.msk.f32.mxu0 %vm3436_vm2, %v3435_v52  ;;  %v3226_v3 = vpack.c.bf16 %v270_v2, %v269_v1 }
 0x4e3   :  { %v582_v55 = vmul.f32 %v3323_v57, %v3315_v54  ;;  %v996_v9 = vpop.permute.xlu1 %995  ;;  %v2854_v54 = vld [vmem:[%s4148_s4 + $0x2] ss:$0 sm:$0xff]  ;;  %v3230_v57 = vpack.c.bf16 %v272_v5, %v271_v4 }
 0x4e5   :  { %3059 = vmatmul.mubr.msk.f32.vlgmr.msra.gmra.mrb[6].mxu0 %vm562_vm4, %v582_v55  ;;  %v273_v55 = vld [vmem:[%s4147_s3 + $0x60] sm:$0xff] }
 0x4ea   :  { %v3325_v6 = vpop.eup %3324 }
 0x4eb   :  { %v766_v7 = vmul.f32 %v3325_v6, %v3319_v60  ;;  %v3327_v8 = vpop.eup %3326  ;;  %v274_v6 = vld [vmem:[%s4147_s3 + $0x68] sm:$0xff] }
 0x4ec   :  { %v584_v10 = vmul.f32 %v3327_v8, %v3317_v58  ;;  %v2855_v58 = vld [vmem:[%s4148_s4 + $0x3] ss:$0 sm:$0xff]  ;;  %v275_v8 = vld [vmem:[%s4147_s3 + $0x70] sm:$0xff] }
 0x4ed   :  { %3054 = vmatmul.mubr.msk.f32.vlgmr.msra.gmra.mrb[6].mxu1 %vm562_vm4, %v766_v7  ;;  %v3234_v7 = vpack.c.bf16 %v274_v6, %v273_v55  ;;  %v2862_v55 = vld [vmem:[%s4148_s4 + $0x6] ss:$0 sm:$0xff] }
 0x4ee   :  { %3062 = vmatpush3.msra.mxu1 %v996_v9  ;;  %3063 = vmatprep.mubr.msk.f32.mxu1 %vm3436_vm2, %v3435_v52  ;;  %v276_v9 = vld [vmem:[%s4147_s3 + $0x78] sm:$0xff] }
 0x4ef   :  { %3227 = vmatprep.subr.bf16.mxu1 %v3226_v3 }
 0x4f1   :  { %3064 = vmatmul.mubr.msk.f32.vlgmr.msra.gmra.mrb[8].mxu1 %vm562_vm4, %v584_v10  ;;  %v3238_v10 = vpack.c.bf16 %v276_v9, %v275_v8  ;;  %v2863_v9 = vld [vmem:[%s4148_s4 + $0x7] ss:$0 sm:$0xff] }
 0x4f2   :  { %3229 = vmatpush3.bf16.msra.mxu1 %v3226_v3 }
 0x4f3   :  { %3231 = vmatprep.subr.bf16.mxu1 %v3230_v57 }
 0x4f6   :  { %3233 = vmatpush3.bf16.msra.mxu1 %v3230_v57 }
 0x4f7   :  { %3235 = vmatprep.subr.bf16.mxu1 %v3234_v7 }
 0x4fa   :  { %3237 = vmatpush3.bf16.msra.mxu1 %v3234_v7 }
 0x4fb   :  { %3239 = vmatprep.subr.bf16.mxu1 %v3238_v10 }
 0x4fe   :  { %3241 = vmatpush3.bf16.msra.mxu1 %v3238_v10 }
 0x4ff   :  { %3112 = vmatprep.subr.mxu1 %v3435_v52 }
 0x5b4   :  { %v839_v11 = vpop.f32.mrb[4].mxu0 }
 0x5b5   :  { %v3050_v12 = vpop.f32.mrb[5].mxu0 }
 0x5b8   :  { %v991_v14 = vpop.f32.mrb[6].mxu0 }
 0x5b9   :  { %v992_v15 = vadd.f32 %v991_v14, %v839_v11  ;;  %v3060_v16 = vpop.f32.mrb[7].mxu0  ;;  %v2856_v11 = vld [vmem:[%s4148_s4 + $0x4] ss:$0 sm:$0xff] }
 0x5bb   :  { %v1075_v17 = vadd.f32 %v2853_v13, %v992_v15 }
 0x5bd   :  { %v1077_v18 = vadd.f32 %v1075_v17, %v3716_v47 }
 0x5bf   :  { %v1079_v19 = vsel %vm218_vm1, %v1077_v18, 0.0 }
 0x5c0   :  { %v915_v20 = vpop.f32.mrb[6].mxu1  ;;  %1080 = vadd.xlane.f32.xlu0 %v1079_v19 }
 0x5c1   :  { %v3055_v21 = vpop.f32.mrb[7].mxu1 }
 0x5c4   :  { %v1067_v22 = vpop.f32.mrb[8].mxu1 }
 0x5c5   :  { %v1068_v24 = vadd.f32 %v1067_v22, %v915_v20  ;;  %v3065_v25 = vpop.f32.mrb[9].mxu1 }
 0x5c7   :  { %v1076_v27 = vadd.f32 %v2853_v13, %v1068_v24 }
 0x5c9   :  { %v1078_v28 = vadd.f32 %v1076_v27, %v3720_v51  ;;  %v265_v51 = vld [vmem:[%s4147_s3 + $0x20] sm:$0xff] }
 0x5ca   :  { %v3218_v40 = vpack.c.bf16 %v266_v39, %v265_v51 }
 0x5cb   :  { %v1082_v29 = vsel %vm218_vm1, %v1078_v28, 0.0 }
 0x5cc   :  { %1083 = vadd.xlane.f32.xlu1 %v1082_v29  ;;  %3219 = vmatprep.subr.bf16.mxu0 %v3218_v40 }
 0x5cd   :  { %3221 = vmatpush3.bf16.msra.mxu0 %v3218_v40 }
 0x5ce   :  { %3223 = vmatprep.subr.bf16.mxu0 %v3222_v43 }
 0x5d1   :  { %3225 = vmatpush3.bf16.msra.mxu0 %v3222_v43 }
 0x64d   :  { %v1081_v30 = vpop.xlane.xlu0 %1080 }
 0x64e   :  { %v1085_v31 = vmul.f32 0.03125, %v1081_v30 }
 0x650   :  { %v1087_v32 = vsub.f32 %v1077_v18, %v1085_v31 }
 0x652   :  { %v1089_v33 = vmul.f32 %v1087_v32, %v1087_v32 }
 0x654   :  { %v1091_v47 = vsel %vm218_vm1, %v1089_v33, 0.0 }
 0x655   :  { %1092 = vadd.xlane.f32.xlu0 %v1091_v47 }
 0x659   :  { %v1084_v34 = vpop.xlane.xlu1 %1083 }
 0x65a   :  { %v1086_v35 = vmul.f32 0.03125, %v1084_v34 }
 0x65c   :  { %v1088_v36 = vsub.f32 %v1078_v28, %v1086_v35  ;;  %v2859_v35 = vld [vmem:[%s4148_s4 + $0x5] ss:$0 sm:$0xff] }
 0x65e   :  { %v1090_v37 = vmul.f32 %v1088_v36, %v1088_v36 }
 0x660   :  { %v1094_v38 = vsel %vm218_vm1, %v1090_v37, 0.0 }
 0x661   :  { %1095 = vadd.xlane.f32.xlu0 %v1094_v38 }
 0x6e2   :  { %v1093_v44 = vpop.xlane.xlu0 %1092 }
 0x6e3   :  { %v1097_v45 = vmul.f32 0.03125, %v1093_v44 }
 0x6e5   :  { %v1099_v46 = vadd.f32 1e-12, %v1097_v45 }
 0x6e7   :  { %3328 = vrsqrt.f32 %v1099_v46 }
 0x6ee   :  { %v1096_v48 = vpop.xlane.xlu0 %1095 }
 0x6ef   :  { %v1098_v49 = vmul.f32 0.03125, %v1096_v48 }
 0x6f1   :  { %v3329_v50 = vpop.eup %3328  ;;  %v1100_v53 = vadd.f32 1e-12, %v1098_v49 }
 0x6f2   :  { %v1103_v56 = vmul.f32 %v3329_v50, %v1087_v32 }
 0x6f3   :  { %3330 = vrsqrt.f32 %v1100_v53 }
 0x6f4   :  { %v1109_v59 = vmul.f32 %v2854_v54, %v1103_v56 }
 0x6f6   :  { %v3835_v60 = vadd.f32 %v2855_v58, %v1109_v59  ;;  %v2865_v59 = vld [vmem:[%s4147_s3 + $0x88] sm:$0xff] }
 0x6f8   :  { %3074 = vmatprep.mubr.msk.f32.mxu0 %vm218_vm1, %v3835_v60 }
 0x6fd   :  { %v3331_v61 = vpop.eup %3330 }
 0x6fe   :  { %v1104_v62 = vmul.f32 %v3331_v61, %v1088_v36  ;;  %v2866_v61 = vld [vmem:[%s4147_s3 + $0x90] sm:$0xff] }
 0x700   :  { %v1110_v63 = vmul.f32 %v2854_v54, %v1104_v62  ;;  %v2867_v62 = vld [vmem:[%s4147_s3 + $0x98] sm:$0xff] }
 0x702   :  { %v1116_v0 = vadd.f32 %v2855_v58, %v1110_v63  ;;  %v2864_v58 = vld [vmem:[%s4147_s3 + $0x80] sm:$0xff]  ;;  %v3246_v63 = vpack.c.bf16 %v2867_v62, %v2866_v61 }
 0x704   :  { %3075 = vmatmul.mubr.msk.f32.vlgmr.msra.gmra.mrb[8].mxu0 %vm218_vm1, %v1116_v0 }
 0x7d7   :  { %v3076_v12 = vpop.f32.mrb[8].mxu0 }
 0x7d8   :  { %v1199_v13 = vadd.f32 %v3076_v12, %v2856_v11  ;;  %v1193_v14 = vpop.f32.mrb[9].mxu0 }
 0x7d9   :  { %v1194_v15 = vadd.f32 %v2856_v11, %v1193_v14  ;;  %v2888_v14 = vld [vmem:[%s4148_s4 + $0x8] ss:$0 sm:$0xff] }
 0x7da   :  { %v1203_v16 = vmul.f32 %v1199_v13, %v1199_v13 }
 0x7db   :  { %v1202_v17 = vmul.f32 %v1194_v15, %v1194_v15 }
 0x7dc   :  { %v1205_v18 = vmul.f32 %v1203_v16, %v1199_v13 }
 0x7dd   :  { %v1204_v19 = vmul.f32 %v1202_v17, %v1194_v15 }
 0x7de   :  { %v1207_v20 = vmul.f32 0.044715, %v1205_v18 }
 0x7df   :  { %v1206_v21 = vmul.f32 0.044715, %v1204_v19 }
 0x7e0   :  { %v1209_v22 = vadd.f32 %v1207_v20, %v1199_v13 }
 0x7e1   :  { %v1208_v24 = vadd.f32 %v1206_v21, %v1194_v15 }
 0x7e2   :  { %v1211_v25 = vmul.f32 0.7978846, %v1209_v22 }
 0x7e3   :  { %v1210_v27 = vmul.f32 0.7978846, %v1208_v24 }
 0x7e4   :  { %3332 = vtanh.f32 %v1211_v25 }
 0x7e5   :  { %3334 = vtanh.f32 %v1210_v27 }
 0x7ee   :  { %v3333_v28 = vpop.eup %3332 }
 0x7ef   :  { %v3335_v29 = vpop.eup %3334  ;;  %v1215_v30 = vadd.f32 1.0, %v3333_v28 }
 0x7f0   :  { %v1214_v31 = vadd.f32 1.0, %v3335_v29 }
 0x7f1   :  { %v1217_v32 = vmul.f32 0.5, %v1215_v30 }
 0x7f2   :  { %v1216_v33 = vmul.f32 0.5, %v1214_v31 }
 0x7f3   :  { %v1219_v34 = vmul.f32 %v1217_v32, %v1199_v13 }
 0x7f4   :  { %v1218_v47 = vmul.f32 %v1216_v33, %v1194_v15 }
 0x7f6   :  { %3093 = vmatprep.mubr.msk.f32.mxu1 %vm1224_vm5, %v1218_v47 }
 0x7f7   :  { %3094 = vmatmul.mubr.msk.f32.vlgmr.msra.gmra.mrb[10].mxu1 %vm1224_vm5, %v1219_v34 }
 0x7f8   :  { %3114 = vmatprep.mubr.msk.f32.mxu1 %vm3436_vm2, %v3435_v52 }
 0x8ca   :  { %v3095_v36 = vpop.f32.mrb[10].mxu1 }
 0x8cb   :  { %v1303_v37 = vadd.f32 %v3095_v36, %v2859_v35  ;;  %v1297_v38 = vpop.f32.mrb[11].mxu1 }
 0x8cc   :  { %v1298_v51 = vadd.f32 %v2859_v35, %v1297_v38 }
 0x8cd   :  { %v1307_v39 = vadd.f32 %v1303_v37, %v1116_v0 }
 0x8ce   :  { %v1306_v40 = vadd.f32 %v1298_v51, %v3835_v60  ;;  %v3242_v60 = vpack.c.bf16 %v2865_v59, %v2864_v58 }
 0x8cf   :  { %v1311_v41 = vsel %vm218_vm1, %v1307_v39, 0.0 }
 0x8d0   :  { %1312 = vadd.xlane.f32.xlu1 %v1311_v41  ;;  %v1308_v42 = vsel %vm218_vm1, %v1306_v40, 0.0  ;;  %3243 = vmatprep.subr.bf16.mxu0 %v3242_v60 }
 0x8d1   :  { %1309 = vadd.xlane.f32.xlu0 %v1308_v42  ;;  %3245 = vmatpush3.bf16.msra.mxu0 %v3242_v60 }
 0x8d2   :  { %3247 = vmatprep.subr.bf16.mxu0 %v3246_v63 }
 0x8d5   :  { %3249 = vmatpush3.bf16.msra.mxu0 %v3246_v63 }
 0x8d6   :  { %3107 = vmatprep.subr.mxu0 %v3435_v52 }
 0x95d   :  { %v1313_v43 = vpop.xlane.xlu1 %1312 }
 0x95e   :  { %v1315_v44 = vmul.f32 0.03125, %v1313_v43  ;;  %v1310_v45 = vpop.xlane.xlu0 %1309 }
 0x95f   :  { %v1314_v46 = vmul.f32 0.03125, %v1310_v45 }
 0x960   :  { %v1317_v48 = vsub.f32 %v1307_v39, %v1315_v44 }
 0x961   :  { %v1316_v49 = vsub.f32 %v1306_v40, %v1314_v46 }
 0x962   :  { %v1319_v50 = vmul.f32 %v1317_v48, %v1317_v48 }
 0x963   :  { %v1318_v53 = vmul.f32 %v1316_v49, %v1316_v49 }
 0x964   :  { %v1323_v54 = vsel %vm218_vm1, %v1319_v50, 0.0 }
 0x965   :  { %1324 = vadd.xlane.f32.xlu1 %v1323_v54  ;;  %v1320_v56 = vsel %vm218_vm1, %v1318_v53, 0.0 }
 0x966   :  { %1321 = vadd.xlane.f32.xlu0 %v1320_v56 }
 0x9f2   :  { %v1325_v0 = vpop.xlane.xlu1 %1324 }
 0x9f3   :  { %v1327_v1 = vmul.f32 0.03125, %v1325_v0  ;;  %v1322_v2 = vpop.xlane.xlu0 %1321 }
 0x9f4   :  { %v1326_v3 = vmul.f32 0.03125, %v1322_v2 }
 0x9f5   :  { %v1329_v4 = vadd.f32 1e-12, %v1327_v1 }
 0x9f6   :  { %v1328_v5 = vadd.f32 1e-12, %v1326_v3 }
 0x9f7   :  { %3336 = vrsqrt.f32 %v1329_v4 }
 0x9f8   :  { %3338 = vrsqrt.f32 %v1328_v5 }
 0xa01   :  { %v3337_v57 = vpop.eup %3336 }
 0xa02   :  { %v3339_v6 = vpop.eup %3338  ;;  %v1333_v7 = vmul.f32 %v3337_v57, %v1317_v48 }
 0xa03   :  { %v1332_v8 = vmul.f32 %v3339_v6, %v1316_v49 }
 0xa04   :  { %v1339_v10 = vmul.f32 %v2862_v55, %v1333_v7 }
 0xa05   :  { %v1338_v11 = vmul.f32 %v2862_v55, %v1332_v8 }
 0xa06   :  { %v3901_v13 = vadd.f32 %v2863_v9, %v1339_v10 }
 0xa07   :  { %v3899_v12 = vadd.f32 %v2863_v9, %v1338_v11 }
 0xa09   :  { %3104 = vmatprep.mubr.msk.f32.mxu0 %vm218_vm1, %v3899_v12 }
 0xa0a   :  { %3105 = vmatmul.mubr.msk.f32.vlgmr.msra.gmra.mrb[10].mxu0 %vm218_vm1, %v3901_v13 }
 0xa0b   :  { %3109 = vmatprep.mubr.msk.f32.mxu0 %vm3436_vm2, %v3435_v52 }
 0xadd   :  { %v3106_v15 = vpop.f32.mrb[10].mxu0 }
 0xade   :  { %v3912_v16 = vadd.f32 %v3106_v15, %v2888_v14  ;;  %v1448_v17 = vpop.f32.mrb[11].mxu0 }
 0xadf   :  { %v3914_v18 = vadd.f32 %v2888_v14, %v1448_v17 }
 0xae0   :  { %1535 = vrot.lane.b32.xlu1 %v3912_v16, %s3437_s10 }
 0xae1   :  { %1458 = vrot.lane.b32.xlu0 %v3914_v18, %s3437_s10 }
 0xae4   :  { %1717 = vrot.lane.b32.xlu1 %v3912_v16, %s3438_s22 }
 0xae5   :  { %1637 = vrot.lane.b32.xlu0 %v3914_v18, %s3439_s16 }
 0xae8   :  { %1639 = vrot.lane.b32.xlu1 %v3914_v18, %s3438_s22  ;;  %s3445_s22 = smov 120  }
 0xaec   :  { %1715 = vrot.lane.b32.xlu1 %v3912_v16, %s3439_s16 }
 0xb52   :  { %v1536_v19 = vpop.permute.xlu1 %1535 }
 0xb53   :  { %3113 = vmatpush3.xpose.msk.msra.mxu1 %vm373_vm3, %v1536_v19  ;;  %v1459_v20 = vpop.permute.xlu0 %1458 }
 0xb54   :  { %3108 = vmatpush3.xpose.msk.msra.mxu0 %vm373_vm3, %v1459_v20  ;;  %3122 = vmatprep.subr.mxu1 %v3435_v52 }
 0xb55   :  { %3117 = vmatprep.subr.mxu0 %v3435_v52 }
 0xb56   :  { %3115 = vmatmul.mubr.msk.f32.vlgmr.msra.gmra.mrb[12].mxu1 %vm373_vm3, %v3912_v16  ;;  %v1718_v21 = vpop.permute.xlu1 %1717 }
 0xb57   :  { %3110 = vmatmul.mubr.msk.f32.vlgmr.msra.gmra.mrb[12].mxu0 %vm373_vm3, %v3914_v18  ;;  %3123 = vmatpush3.xpose.msk.msra.mxu1 %vm373_vm3, %v1718_v21  ;;  %v1638_v24 = vpop.permute.xlu0 %1637 }
 0xb58   :  { %3119 = vmatprep.mubr.msk.f32.mxu0 %vm3436_vm2, %v3435_v52  ;;  %3124 = vmatprep.mubr.msk.f32.mxu1 %vm3436_vm2, %v3435_v52 }
 0xb59   :  { %3132 = vmatprep.subr.mxu1 %v3435_v52 }
 0xb5a   :  { %v1640_v22 = vpop.permute.xlu1 %1639 }
 0xb5b   :  { %3118 = vmatpush3.xpose.msk.msra.mxu0 %vm373_vm3, %v1640_v22 }
 0xb5c   :  { %3127 = vmatprep.subr.mxu0 %v3435_v52 }
 0xb5e   :  { %v1716_v25 = vpop.permute.xlu1 %1715  ;;  %3120 = vmatmul.mubr.msk.f32.vlgmr.msra.gmra.mrb[14].mxu0 %vm373_vm3, %v1638_v24  ;;  %v2903_v24 = vld [vmem:[%s4148_s4 + $0x9] ss:$0 sm:$0xff] }
 0xb5f   :  { %3125 = vmatmul.mubr.msk.f32.vlgmr.msra.gmra.mrb[14].mxu1 %vm373_vm3, %v1716_v25  ;;  %3129 = vmatprep.mubr.msk.f32.mxu0 %vm3436_vm2, %v3435_v52 }
 0xb60   :  { %3134 = vmatprep.mubr.msk.f32.mxu1 %vm3436_vm2, %v3435_v52 }
 0xc29   :  { %v1607_v27 = vpop.f32.mrb[12].mxu1 }
 0xc2a   :  { %v1530_v28 = vpop.f32.mrb[12].mxu0  ;;  %v3116_v29 = vpop.f32.mrb[13].mxu1  ;;  %v1612_v51 = vmul.f32 0.25, %v1607_v27 }
 0xc2b   :  { %v3111_v30 = vpop.f32.mrb[13].mxu0  ;;  %v1611_v32 = vmul.f32 0.25, %v1530_v28 }
 0xc2c   :  { %v1614_v43 = vadd.f32 %v1612_v51, %v3776_v26 }
 0xc2d   :  { %v1613_v40 = vadd.f32 %v1611_v32, %v3774_v23 }
 0xc2e   :  { %v1618_v44 = vsel %vm562_vm4, %v1614_v43, -inf }
 0xc2f   :  { %v1615_v42 = vsel %vm562_vm4, %v1613_v40, -inf }
 0xc31   :  { %v1711_v31 = vpop.f32.mrb[14].mxu0 }
 0xc32   :  { %v1793_v33 = vmul.f32 0.25, %v1711_v31  ;;  %v3121_v47 = vpop.f32.mrb[15].mxu0  ;;  %v1789_v34 = vpop.f32.mrb[14].mxu1 }
 0xc33   :  { %v1794_v35 = vmul.f32 0.25, %v1789_v34  ;;  %v3126_v36 = vpop.f32.mrb[15].mxu1 }
 0xc34   :  { %v1795_v37 = vadd.f32 %v1793_v33, %v3774_v23 }
 0xc35   :  { %v1796_v38 = vadd.f32 %v1794_v35, %v3776_v26 }
 0xc36   :  { %v1797_v39 = vsel %vm562_vm4, %v1795_v37, -inf }
 0xc37   :  { %1798 = vmax.xlane.f32.xlu0 %v1797_v39  ;;  %v1800_v41 = vsel %vm562_vm4, %v1796_v38, -inf }
 0xc38   :  { %1801 = vmax.xlane.f32.xlu1 %v1800_v41 }
 0xc3b   :  { %1616 = vmax.xlane.f32.xlu0 %v1615_v42 }
 0xc3f   :  { %1619 = vmax.xlane.f32.xlu0 %v1618_v44 }
 0xcc4   :  { %v1799_v45 = vpop.xlane.xlu0 %1798 }
 0xcc5   :  { %v1803_v46 = vsub.f32 %v1795_v37, %v1799_v45  ;;  %v1802_v48 = vpop.xlane.xlu1 %1801 }
 0xcc6   :  { %v1804_v54 = vsub.f32 %v1796_v38, %v1802_v48 }
 0xcc7   :  { %v1805_v53 = vmul.f32 1.442695, %v1803_v46  ;;  %v2869_v46 = vld [vmem:[%s4147_s3 + $0xa8] sm:$0xff] }
 0xcc8   :  { %v1617_v49 = vpop.xlane.xlu0 %1616  ;;  %v1807_v59 = vmul.f32 1.442695, %v1804_v54 }
 0xcc9   :  { %v1621_v50 = vsub.f32 %v1613_v40, %v1617_v49  ;;  %v2870_v49 = vld [vmem:[%s4147_s3 + $0xb0] sm:$0xff] }
 0xccb   :  { %v1623_v23 = vmul.f32 1.442695, %v1621_v50  ;;  %v2871_v50 = vld [vmem:[%s4147_s3 + $0xb8] sm:$0xff] }
 0xccc   :  { %v1620_v56 = vpop.xlane.xlu0 %1619 }
 0xccd   :  { %3340 = vpow2.f32 %v1623_v23  ;;  %v1622_v58 = vsub.f32 %v1614_v43, %v1620_v56 }
 0xcce   :  { %3342 = vpow2.f32 %v1805_v53  ;;  %v3254_v53 = vpack.c.bf16 %v2871_v50, %v2870_v49 }
 0xccf   :  { %v1625_v60 = vmul.f32 1.442695, %v1622_v58 }
 0xcd1   :  { %3344 = vpow2.f32 %v1625_v60 }
 0xcd2   :  { %3346 = vpow2.f32 %v1807_v59 }
 0xcd7   :  { %v3341_v26 = vpop.eup %3340 }
 0xcd8   :  { %v1627_v61 = vsel %vm562_vm4, %v3341_v26, 0.0  ;;  %v3343_v62 = vpop.eup %3342 }
 0xcd9   :  { %1628 = vadd.xlane.f32.xlu0 %v1627_v61  ;;  %v1809_v0 = vsel %vm562_vm4, %v3343_v62, 0.0  ;;  %v2904_v61 = vld [vmem:[%s4148_s4 + $0xa] ss:$0 sm:$0xff] }
 0xcdb   :  { %v3345_v63 = vpop.eup %3344 }
 0xcdc   :  { %v1630_v1 = vsel %vm562_vm4, %v3345_v63, 0.0  ;;  %v3347_v2 = vpop.eup %3346 }
 0xcdd   :  { %1810 = vadd.xlane.f32.xlu0 %v1809_v0  ;;  %1631 = vadd.xlane.f32.xlu1 %v1630_v1  ;;  %v1812_v3 = vsel %vm562_vm4, %v3347_v2, 0.0 }
 0xce1   :  { %1813 = vadd.xlane.f32.xlu1 %v1812_v3 }
 0xcf2   :  { %1895 = vrot.lane.b32.xlu1 %v3912_v16, %s3441_s17 }
 0xcf3   :  { %1819 = vrot.lane.b32.xlu0 %v3914_v18, %s3441_s17  ;;  %s2914_s17 = sld [smem:[#allocation4 + $0x20]] }
 0xcf6   :  { %1971 = vrot.lane.b32.xlu1 %v3914_v18, %s3442_s0 }
 0xcf9   :  { %s2400_s30 = scalar_lea.vmem [#allocation2], %s2914_s17 }
 0xcfa   :  { %2047 = vrot.lane.b32.xlu1 %v3912_v16, %s3442_s0  ;;  %s2915_s0 = sld [smem:[#allocation4 + $0x21]] }
 0xd00   :  { %s2404_s20 = scalar_lea.vmem [#allocation2], %s2915_s0 }
 0xd66   :  { %v1629_v4 = vpop.xlane.xlu0 %1628 }
 0xd6a   :  { %v1632_v5 = vpop.xlane.xlu1 %1631  ;;  %v1811_v57 = vpop.xlane.xlu0 %1810 }
 0xd6b   :  { %3348 = vrcp.f32 %v1811_v57  ;;  %v2872_v57 = vld [vmem:[%s4147_s3 + $0xc0] sm:$0xff] }
 0xd6c   :  { %3350 = vrcp.f32 %v1629_v4 }
 0xd6e   :  { %v1814_v55 = vpop.xlane.xlu1 %1813  ;;  %v1820_v6 = vpop.permute.xlu0 %1819 }
 0xd6f   :  { %3352 = vrcp.f32 %v1814_v55  ;;  %3128 = vmatpush3.msra.mxu0 %v1820_v6  ;;  %v2873_v55 = vld [vmem:[%s4147_s3 + $0xc8] sm:$0xff] }
 0xd70   :  { %3137 = vmatprep.subr.mxu0 %v3435_v52  ;;  %3354 = vrcp.f32 %v1632_v5  ;;  %v3258_v6 = vpack.c.bf16 %v2873_v55, %v2872_v57  ;;  %v2434_v57 = vld [vmem:[%s4146_s2 + $0xa4] sm:$0xff]  ;;  %v2435_v55 = vld [vmem:[%s4146_s2 + $0xac] sm:$0xff] }
 0xd72   :  { %v1896_v7 = vpop.permute.xlu1 %1895 }
 0xd73   :  { %3133 = vmatpush3.msra.mxu1 %v1896_v7  ;;  %v2874_v7 = vld [vmem:[%s4147_s3 + $0xd0] sm:$0xff] }
 0xd74   :  { %3142 = vmatprep.subr.mxu1 %v3435_v52 }
 0xd75   :  { %v3349_v8 = vpop.eup %3348 }
 0xd76   :  { %v1972_v9 = vpop.permute.xlu1 %1971  ;;  %v1816_v10 = vmul.f32 %v3349_v8, %v3343_v62  ;;  %v3351_v11 = vpop.eup %3350  ;;  %v2875_v8 = vld [vmem:[%s4147_s3 + $0xd8] sm:$0xff] }
 0xd77   :  { %v1634_v18 = vmul.f32 %v3351_v11, %v3341_v26  ;;  %v2877_v11 = vld [vmem:[%s4147_s3 + $0xe8] sm:$0xff] }
 0xd78   :  { %3130 = vmatmul.mubr.msk.f32.vlgmr.msra.gmra.mrb[16].mxu0 %vm562_vm4, %v1816_v10  ;;  %v2876_v10 = vld [vmem:[%s4147_s3 + $0xe0] sm:$0xff] }
 0xd79   :  { %v3353_v14 = vpop.eup %3352  ;;  %3138 = vmatpush3.msra.mxu0 %v1972_v9  ;;  %3139 = vmatprep.mubr.msk.f32.mxu0 %vm3436_vm2, %v3435_v52  ;;  %v3262_v9 = vpack.c.bf16 %v2875_v8, %v2874_v7  ;;  %v3290_v7 = vpack.c.bf16 %v2435_v55, %v2434_v57 }
 0xd7a   :  { %v1818_v15 = vmul.f32 %v3353_v14, %v3347_v2  ;;  %v2048_v16 = vpop.permute.xlu1 %2047  ;;  %v3355_v17 = vpop.eup %3354  ;;  %v3266_v14 = vpack.c.bf16 %v2877_v11, %v2876_v10 }
 0xd7b   :  { %v1636_v19 = vmul.f32 %v3355_v17, %v3345_v63  ;;  %v2905_v63 = vld [vmem:[%s4148_s4 + $0xb] ss:$0 sm:$0xff] }
 0xd7c   :  { %3135 = vmatmul.mubr.msk.f32.vlgmr.msra.gmra.mrb[16].mxu1 %vm562_vm4, %v1818_v15  ;;  %3140 = vmatmul.mubr.msk.f32.vlgmr.msra.gmra.mrb[18].mxu0 %vm562_vm4, %v1634_v18  ;;  %v2878_v15 = vld [vmem:[%s4147_s3 + $0xf0] sm:$0xff]  ;;  %v2906_v18 = vld [vmem:[%s4148_s4 + $0xc] ss:$0 sm:$0xff] }
 0xd7d   :  { %3143 = vmatpush3.msra.mxu1 %v2048_v16  ;;  %3144 = vmatprep.mubr.msk.f32.mxu1 %vm3436_vm2, %v3435_v52  ;;  %v2879_v16 = vld [vmem:[%s4147_s3 + $0xf8] sm:$0xff] }
 0xd7e   :  { %3259 = vmatprep.subr.bf16.mxu1 %v3258_v6  ;;  %v3270_v17 = vpack.c.bf16 %v2879_v16, %v2878_v15 }
 0xd80   :  { %3145 = vmatmul.mubr.msk.f32.vlgmr.msra.gmra.mrb[18].mxu1 %vm562_vm4, %v1636_v19 }
 0xd81   :  { %3261 = vmatpush3.bf16.msra.mxu1 %v3258_v6 }
 0xd82   :  { %3263 = vmatprep.subr.bf16.mxu1 %v3262_v9 }
 0xd85   :  { %3265 = vmatpush3.bf16.msra.mxu1 %v3262_v9 }
 0xd86   :  { %3267 = vmatprep.subr.bf16.mxu1 %v3266_v14 }
 0xd89   :  { %3269 = vmatpush3.bf16.msra.mxu1 %v3266_v14 }
 0xd8a   :  { %3271 = vmatprep.subr.bf16.mxu1 %v3270_v17 }
 0xd8d   :  { %3273 = vmatpush3.bf16.msra.mxu1 %v3270_v17  ;;  %v2912_v17 = vld [vmem:[%s4148_s4 + $0xe] ss:$0 sm:$0xff] }
 0xe4b   :  { %v1891_v20 = vpop.f32.mrb[16].mxu0 }
 0xe4c   :  { %v3131_v21 = vpop.f32.mrb[17].mxu0 }
 0xe4f   :  { %v1967_v22 = vpop.f32.mrb[16].mxu1  ;;  %v2043_v25 = vpop.f32.mrb[18].mxu0 }
 0xe50   :  { %v3136_v27 = vpop.f32.mrb[17].mxu1  ;;  %v2044_v28 = vadd.f32 %v2043_v25, %v1891_v20  ;;  %v3141_v29 = vpop.f32.mrb[19].mxu0 }
 0xe52   :  { %v2127_v30 = vadd.f32 %v2903_v24, %v2044_v28 }
 0xe53   :  { %v2119_v31 = vpop.f32.mrb[18].mxu1 }
 0xe54   :  { %v2120_v32 = vadd.f32 %v2119_v31, %v1967_v22  ;;  %v3146_v33 = vpop.f32.mrb[19].mxu1  ;;  %v2129_v47 = vadd.f32 %v2127_v30, %v3899_v12 }
 0xe56   :  { %v2128_v34 = vadd.f32 %v2903_v24, %v2120_v32  ;;  %v2131_v35 = vsel %vm218_vm1, %v2129_v47, 0.0 }
 0xe57   :  { %2132 = vadd.xlane.f32.xlu0 %v2131_v35 }
 0xe58   :  { %v2130_v36 = vadd.f32 %v2128_v34, %v3901_v13  ;;  %v2868_v13 = vld [vmem:[%s4147_s3 + $0xa0] sm:$0xff]  ;;  %s2918_s3 = sld [smem:[#allocation4 + $0x24]] }
 0xe59   :  { %v3250_v48 = vpack.c.bf16 %v2869_v46, %v2868_v13 }
 0xe5a   :  { %v2134_v37 = vsel %vm218_vm1, %v2130_v36, 0.0 }
 0xe5b   :  { %2135 = vadd.xlane.f32.xlu1 %v2134_v37  ;;  %3251 = vmatprep.subr.bf16.mxu0 %v3250_v48 }
 0xe5c   :  { %3253 = vmatpush3.bf16.msra.mxu0 %v3250_v48 }
 0xe5d   :  { %3255 = vmatprep.subr.bf16.mxu0 %v3254_v53 }
 0xe5e   :  { %s2416_s21 = scalar_lea.vmem [#allocation2], %s2918_s3 }
 0xe60   :  { %3257 = vmatpush3.bf16.msra.mxu0 %v3254_v53 }
 0xee4   :  { %v2133_v38 = vpop.xlane.xlu0 %2132 }
 0xee5   :  { %v2137_v51 = vmul.f32 0.03125, %v2133_v38 }
 0xee7   :  { %v2139_v39 = vsub.f32 %v2129_v47, %v2137_v51 }
 0xee8   :  { %v2136_v40 = vpop.xlane.xlu1 %2135 }
 0xee9   :  { %v2138_v41 = vmul.f32 0.03125, %v2136_v40  ;;  %v2141_v42 = vmul.f32 %v2139_v39, %v2139_v39 }
 0xeeb   :  { %v2140_v43 = vsub.f32 %v2130_v36, %v2138_v41  ;;  %v2143_v44 = vsel %vm218_vm1, %v2141_v42, 0.0  ;;  %v2909_v41 = vld [vmem:[%s4148_s4 + $0xd] ss:$0 sm:$0xff] }
 0xeec   :  { %2144 = vadd.xlane.f32.xlu0 %v2143_v44 }
 0xeed   :  { %v2142_v12 = vmul.f32 %v2140_v43, %v2140_v43 }
 0xeef   :  { %v2146_v45 = vsel %vm218_vm1, %v2142_v12, 0.0 }
 0xef0   :  { %2147 = vadd.xlane.f32.xlu0 %v2146_v45 }
 0xf79   :  { %v2145_v54 = vpop.xlane.xlu0 %2144 }
 0xf7a   :  { %v2149_v23 = vmul.f32 0.03125, %v2145_v54 }
 0xf7c   :  { %v2151_v56 = vadd.f32 1e-12, %v2149_v23 }
 0xf7d   :  { %v2148_v58 = vpop.xlane.xlu0 %2147 }
 0xf7e   :  { %3356 = vrsqrt.f32 %v2151_v56  ;;  %v2150_v59 = vmul.f32 0.03125, %v2148_v58 }
 0xf80   :  { %v2152_v60 = vadd.f32 1e-12, %v2150_v59 }
 0xf82   :  { %3358 = vrsqrt.f32 %v2152_v60 }
 0xf88   :  { %v3357_v26 = vpop.eup %3356 }
 0xf89   :  { %v2155_v62 = vmul.f32 %v3357_v26, %v2139_v39 }
 0xf8b   :  { %v2161_v0 = vmul.f32 %v2904_v61, %v2155_v62  ;;  %v2429_v62 = vld [vmem:[%s4146_s2 + $0x7c] sm:$0xff] }
 0xf8c   :  { %v3359_v1 = vpop.eup %3358 }
 0xf8d   :  { %v2156_v2 = vmul.f32 %v3359_v1, %v2140_v43  ;;  %v2167_v3 = vadd.f32 %v2905_v63, %v2161_v0  ;;  %v3443_v0 = vmov 0.0|0.0  }
 0xf8e   :  { %3274 = vmatprep.subr.bf16.mxu0 %v3443_v0  ;;  %3286 = vmatprep.subr.bf16.mxu1 %v3443_v0 }
 0xf8f   :  { %v2162_v4 = vmul.f32 %v2904_v61, %v2156_v2  ;;  %3155 = vmatprep.mubr.msk.f32.mxu0 %vm218_vm1, %v2167_v3  ;;  %v2428_v61 = vld [vmem:[%s4146_s2 + $0x74] sm:$0xff]  ;;  %v2433_v2 = vld [vmem:[%s4146_s2 + $0x9c] sm:$0xff] }
 0xf90   :  { %v3275_v1 = vpack.c.bf16 %v2429_v62, %v2428_v61 }
 0xf91   :  { %v2168_v5 = vadd.f32 %v2905_v63, %v2162_v4  ;;  %v2432_v63 = vld [vmem:[%s4146_s2 + $0x94] sm:$0xff]  ;;  %v2431_v4 = vld [vmem:[%s4146_s2 + $0x8c] sm:$0xff] }
 0xf93   :  { %3156 = vmatmul.mubr.msk.f32.vlgmr.msra.gmra.mrb[20].mxu0 %vm218_vm1, %v2168_v5 }
 0xf94   :  { %3185 = vmatprep.mubr.msk.f32.mxu0 %vm3436_vm2, %v3435_v52  ;;  %3276 = vmatpush3.bf16.msra.mxu0 %v3275_v1 }
 0xf95   :  { %3277 = vmatprep.subr.bf16.mxu0 %v3443_v0 }
0x1066   :  { %v3157_v19 = vpop.f32.mrb[20].mxu0 }
0x1067   :  { %v2251_v20 = vadd.f32 %v3157_v19, %v2906_v18  ;;  %v2245_v21 = vpop.f32.mrb[21].mxu0 }
0x1068   :  { %v2246_v22 = vadd.f32 %v2906_v18, %v2245_v21 }
0x1069   :  { %v2255_v24 = vmul.f32 %v2251_v20, %v2251_v20 }
0x106a   :  { %v2254_v25 = vmul.f32 %v2246_v22, %v2246_v22 }
0x106b   :  { %v2257_v27 = vmul.f32 %v2255_v24, %v2251_v20 }
0x106c   :  { %v2256_v28 = vmul.f32 %v2254_v25, %v2246_v22 }
0x106d   :  { %v2259_v29 = vmul.f32 0.044715, %v2257_v27 }
0x106e   :  { %v2258_v30 = vmul.f32 0.044715, %v2256_v28 }
0x106f   :  { %v2261_v31 = vadd.f32 %v2259_v29, %v2251_v20 }
0x1070   :  { %v2260_v32 = vadd.f32 %v2258_v30, %v2246_v22 }
0x1071   :  { %v2263_v33 = vmul.f32 0.7978846, %v2261_v31 }
0x1072   :  { %v2262_v47 = vmul.f32 0.7978846, %v2260_v32 }
0x1073   :  { %3360 = vtanh.f32 %v2263_v33 }
0x1074   :  { %3362 = vtanh.f32 %v2262_v47  ;;  %v2424_v47 = vld [vmem:[%s4146_s2 + $0x54] sm:$0xff] }
0x107d   :  { %v3361_v34 = vpop.eup %3360 }
0x107e   :  { %v3363_v35 = vpop.eup %3362  ;;  %v2267_v36 = vadd.f32 1.0, %v3361_v34  ;;  %v2425_v34 = vld [vmem:[%s4146_s2 + $0x5c] sm:$0xff] }
0x107f   :  { %v2266_v37 = vadd.f32 1.0, %v3363_v35 }
0x1080   :  { %v2269_v38 = vmul.f32 0.5, %v2267_v36  ;;  %v3281_v36 = vpack.c.bf16 %v2425_v34, %v2424_v47 }
0x1081   :  { %v2268_v51 = vmul.f32 0.5, %v2266_v37 }
0x1082   :  { %v2271_v40 = vmul.f32 %v2269_v38, %v2251_v20  ;;  %v2913_v20 = vld [vmem:[%s4148_s4 + $0xf] ss:$0 sm:$0xff]  ;;  %s2408_s4 = scalar_lea.vmem [#allocation2], %s2916_s8 }
0x1083   :  { %v2270_v39 = vmul.f32 %v2268_v51, %v2246_v22  ;;  %v2426_v51 = vld [vmem:[%s4146_s2 + $0x64] sm:$0xff] }
0x1085   :  { %3174 = vmatprep.mubr.msk.f32.mxu1 %vm1224_vm5, %v2270_v39  ;;  %v2427_v39 = vld [vmem:[%s4146_s2 + $0x6c] sm:$0xff] }
0x1086   :  { %3175 = vmatmul.mubr.msk.f32.vlgmr.msra.gmra.mrb[20].mxu1 %vm1224_vm5, %v2271_v40  ;;  %v3284_v40 = vpack.c.bf16 %v2427_v39, %v2426_v51 }
0x1087   :  { %3207 = vmatprep.mubr.msk.f32.mxu1 %vm3436_vm2, %v3435_v52 }
0x1159   :  { %v3176_v42 = vpop.f32.mrb[20].mxu1 }
0x115a   :  { %v2354_v43 = vadd.f32 %v3176_v42, %v2909_v41  ;;  %v2348_v44 = vpop.f32.mrb[21].mxu1 }
0x115b   :  { %v2349_v12 = vadd.f32 %v2909_v41, %v2348_v44 }
0x115c   :  { %v2358_v45 = vadd.f32 %v2354_v43, %v2168_v5  ;;  %v3287_v5 = vpack.c.bf16 %v2433_v2, %v2432_v63 }
0x115d   :  { %v2357_v13 = vadd.f32 %v2349_v12, %v2167_v3  ;;  %v2430_v3 = vld [vmem:[%s4146_s2 + $0x84] sm:$0xff] }
0x115e   :  { %v2362_v46 = vsel %vm218_vm1, %v2358_v45, 0.0  ;;  %v3278_v6 = vpack.c.bf16 %v2431_v4, %v2430_v3  ;;  %3288 = vmatpush3.bf16.msra.mxu1 %v3287_v5 }
0x115f   :  { %2363 = vadd.xlane.f32.xlu1 %v2362_v46  ;;  %v2359_v48 = vsel %vm218_vm1, %v2357_v13, 0.0  ;;  %3289 = vmatprep.subr.bf16.mxu1 %v3443_v0  ;;  %v2923_v46 = vld [vmem:[%s4146_s2 + $0xb4] ss:$0 sm:$0xff] }
0x1160   :  { %2360 = vadd.xlane.f32.xlu0 %v2359_v48  ;;  %3279 = vmatpush3.bf16.msra.mxu0 %v3278_v6 }
0x1161   :  { %3280 = vmatprep.subr.bf16.mxu0 %v3443_v0 }
0x1162   :  { %3291 = vmatpush3.bf16.msra.mxu1 %v3290_v7 }
0x11ec   :  { %v2364_v49 = vpop.xlane.xlu1 %2363 }
0x11ed   :  { %v2366_v50 = vmul.f32 0.03125, %v2364_v49  ;;  %v2361_v53 = vpop.xlane.xlu0 %2360 }
0x11ee   :  { %v2365_v54 = vmul.f32 0.03125, %v2361_v53 }
0x11ef   :  { %v2368_v23 = vsub.f32 %v2358_v45, %v2366_v50  ;;  %v2664_v50 = vld [vmem:[%s4145_s1] sm:$0x3]  ;;  %s3446_s1 = smov [#allocation7]  }
0x11f0   :  { %v2367_v56 = vsub.f32 %v2357_v13, %v2365_v54  ;;  %s2712_s2 = sshll.u32 %s3446_s1, 4  ;;  %s2713_s2 = int_to_ptr.vmem [resolvable:$true] %s2712_s2 }
0x11f1   :  { %v2370_v58 = vmul.f32 %v2368_v23, %v2368_v23  ;;  %s3384_s16 = scalar_lea.vmem %s2713_s2, 32  ;;  %p3389_p6 = scmp.lt.s32.totalorder %s2713_s2, %s2713_s2 }
0x11f2   :  { %v2369_v59 = vmul.f32 %v2367_v56, %v2367_v56  ;;  %p3385_p5 = scmp.ne.s32.totalorder %s2713_s2, %s3384_s16  ;;  %p3390_p7 = scmp.lt.s32.totalorder %s3384_s16, %s3384_s16 }
0x11f3   :  { %v2374_v60 = vsel %vm218_vm1, %v2370_v58, 0.0 }
0x11f4   :  { %2375 = vadd.xlane.f32.xlu1 %v2374_v60  ;;  %v2371_v26 = vsel %vm218_vm1, %v2369_v59, 0.0  ;;  %p3391_p8 = por %p3390_p7, %p3389_p6 }
0x11f5   :  { %2372 = vadd.xlane.f32.xlu0 %v2371_v26 }
0x11f6   :  { %p3392_p9 = pnand %p3391_p8, %p3385_p5 }
0x1281   :  { %v2376_v8 = vpop.xlane.xlu1 %2375 }
0x1282   :  { %v2378_v9 = vmul.f32 0.03125, %v2376_v8  ;;  %v2373_v10 = vpop.xlane.xlu0 %2372 }
0x1283   :  { %v2377_v11 = vmul.f32 0.03125, %v2373_v10 }
0x1284   :  { %v2380_v14 = vadd.f32 1e-12, %v2378_v9 }
0x1285   :  { %v2379_v15 = vadd.f32 1e-12, %v2377_v11 }
0x1286   :  { %3364 = vrsqrt.f32 %v2380_v14 }
0x1287   :  { %3366 = vrsqrt.f32 %v2379_v15 }
0x1290   :  { %v3365_v16 = vpop.eup %3364 }
0x1291   :  { %v3367_v18 = vpop.eup %3366  ;;  %v2384_v19 = vmul.f32 %v3365_v16, %v2368_v23 }
0x1292   :  { %v2383_v21 = vmul.f32 %v3367_v18, %v2367_v56 }
0x1293   :  { %v2390_v22 = vmul.f32 %v2912_v17, %v2384_v19 }
0x1294   :  { %v2389_v24 = vmul.f32 %v2912_v17, %v2383_v21 }
0x1295   :  { %v2396_v25 = vadd.f32 %v2913_v20, %v2390_v22 }
0x1296   :  { %v2395_v27 = vadd.f32 %v2913_v20, %v2389_v24 }
0x1297   :  { %2398 = vst.msk [vmem:[#allocation2 + $0x8] sm:$0xff] %vm218_vm1, %v2396_v25 }
0x1298   :  { %2397 = vst.msk [vmem:[#allocation2] sm:$0xff] %vm218_vm1, %v2395_v27 }
0x129f   :  { %v2401_v28 = vld [vmem:[%s2400_s30] sm:$0x1] }
0x12a0   :  { %v2405_v29 = vld [vmem:[%s2404_s20] sm:$0x1]  ;;  %2402 = vst.msk [vmem:[#allocation3] sm:$0x1] %vm47_vm0, %v2401_v28 }
0x12a1   :  { %v2409_v30 = vld [vmem:[%s2408_s4] sm:$0x1]  ;;  %2406 = vst.msk [vmem:[#allocation3 + $0x1] sm:$0x1] %vm47_vm0, %v2405_v29 }
0x12a2   :  { %2410 = vst.msk [vmem:[#allocation3 + $0x2] sm:$0x1] %vm47_vm0, %v2409_v30  ;;  %v2413_v31 = vld [vmem:[%s2412_s28] sm:$0x1] }
0x12a3   :  { %v2417_v32 = vld [vmem:[%s2416_s21] sm:$0x1]  ;;  %2414 = vst.msk [vmem:[#allocation3 + $0x3] sm:$0x1] %vm47_vm0, %v2413_v31 }
0x12a4   :  { %v2421_v33 = vld [vmem:[%s2420_s24] sm:$0x1]  ;;  %2418 = vst.msk [vmem:[#allocation3 + $0x4] sm:$0x1] %vm47_vm0, %v2417_v32 }
0x12a5   :  { %2422 = vst.msk [vmem:[#allocation3 + $0x5] sm:$0x1] %vm47_vm0, %v2421_v33 }
0x12ac   :  { %v2423_v35 = vld [vmem:[#allocation3] sm:$0x3f] }
0x12ad   :  { %v2438_v37 = vrot.slane %v2423_v35, 2  ;;  %v2583_v38 = vrot.slane %v2423_v35, 4 }
0x12af   :  { %3186 = vmatmul.mubr.msk.f32.vlgmr.msra.gmra.mrb[22].mxu0 %vm218_vm1, %v2438_v37  ;;  %3208 = vmatmul.mubr.msk.f32.vlgmr.msra.gmra.mrb[22].mxu1 %vm218_vm1, %v2583_v38 }
0x12b0   :  { %3282 = vmatpush3.bf16.msra.mxu0 %v3281_v36  ;;  %3196 = vmatprep.mubr.msk.f32.mxu0 %vm3436_vm2, %v3435_v52 }
0x12b1   :  { %3283 = vmatprep.subr.bf16.mxu0 %v3443_v0 }
0x12b4   :  { %3285 = vmatpush3.bf16.msra.mxu0 %v3284_v40 }
0x12b7   :  { %3197 = vmatmul.mubr.msk.f32.vlgmr.msra.gmra.mrb[24].mxu0 %vm218_vm1, %v2423_v35 }
0x1382   :  { %v2507_v41 = vpop.f32.mrb[22].mxu0  ;;  %v2652_v42 = vpop.f32.mrb[22].mxu1 }
0x1383   :  { %v3187_v43 = vpop.f32.mrb[23].mxu0  ;;  %v3209_v44 = vpop.f32.mrb[23].mxu1 }
0x138a   :  { %v2579_v12 = vpop.f32.mrb[24].mxu0 }
0x138b   :  { %v2580_v45 = vadd.f32 %v2579_v12, %v2507_v41  ;;  %v3198_v13 = vpop.f32.mrb[25].mxu0 }
0x138d   :  { %v2656_v48 = vadd.f32 %v2652_v42, %v2580_v45 }
0x138f   :  { %v2661_v49 = vadd.f32 %v2923_v46, %v2656_v48 }
0x1391   :  { %2678 = vrot.lane.b32.xlu0 %v2661_v49, %s3444_s19  ;;  %v2665_v52 = vsel %vm2662_vm6, %v2661_v49, -inf  ;;  %2663 = vst.msk [vmem:[#allocation7] sm:$0x3] %vm2662_vm6, %v2661_v49 }
0x1392   :  { %2666 = vmax.xlane.f32.xlu1 %v2665_v52 }
0x1403   :  { %v2679_v53 = vpop.permute.xlu0 %2678 }
0x1404   :  { %v2681_v54 = vmul.f32 %v2679_v53, %v2664_v50 }
0x1406   :  { %2683 = vrot.lane.b32.xlu1 %v2681_v54, %s3445_s22 }
0x141f   :  { %v2667_v23 = vpop.xlane.xlu1 %2666 }
0x1420   :  { %v2668_v56 = vsub.f32 %v2661_v49, %v2667_v23 }
0x1422   :  { %v2669_v58 = vmul.f32 1.442695, %v2668_v56 }
0x1424   :  { %3368 = vpow2.f32 %v2669_v58 }
0x142e   :  { %v3369_v59 = vpop.eup %3368 }
0x142f   :  { %v2671_v60 = vsel %vm2662_vm6, %v3369_v59, 0.0 }
0x1430   :  { %2672 = vadd.xlane.f32.xlu1 %v2671_v60 }
0x1478   :  { %v2684_v26 = vpop.permute.xlu1 %2683 }
0x1479   :  { %v2686_v61 = vsel %vm2662_vm6, %v2684_v26, 0.0 }
0x147a   :  { %2687 = vadd.xlane.f32.xlu0 %v2686_v61 }
0x14bd   :  { %v2673_v62 = vpop.xlane.xlu1 %2672 }
0x14be   :  { %3370 = vlog2.f32 %v2673_v62 }
0x14c8   :  { %v3371_v63 = vpop.eup %3370 }
0x14c9   :  { %v2675_v0 = vmul.f32 0.6931472, %v3371_v63 }
0x14cb   :  { %v2676_v1 = vadd.f32 %v2675_v0, %v2667_v23 }
0x1507   :  { %v2688_v2 = vpop.xlane.xlu0 %2687 }
0x1508   :  { %v2689_v3 = vsub.f32 %v2676_v1, %v2688_v2 }
0x150a   :  { %v2691_v4 = vsel %vm2690_vm7, %v2689_v3, 0.0 }
0x150b   :  { %2692 = vadd.xlane.f32.xlu0 %v2691_v4 }
0x150c   :  { %3395 = shalt.err (!%p3392_p9)
}
0x150d   :  { %s3396_s8 = scalar_lea.hbm %s4149_s5, 32 }
0x150e   :  { %p3397_p10 = scmp.ne.s32.totalorder %s4149_s5, %s3396_s8  ;;  %p3400_p11 = scmp.lt.u32.totalorder %s3396_s8, %s4149_s5 }
0x1510   :  { %p3402_p12 = pnand %p3400_p11, %p3397_p10 }
0x1512   :  { %3405 = shalt.err (!%p3402_p12)
}
0x1513   :  { %2715 = dma.vmem_to_hbm [thread:$0]  %s2713_s2, 32, %s4149_s5, [#allocation5]   ;;  %vm2704_vm8 = vcmask 0  }
0x1514   :  { %s3447_s28 = smov [#allocation8]  }
0x1515   :  { %s2722_s21 = sshll.u32 %s3447_s28, 4  ;;  %s2723_s21 = int_to_ptr.vmem [resolvable:$true] %s2722_s21 }
0x1516   :  { %s3406_s7 = scalar_lea.vmem %s2723_s21, 16  ;;  %s3410_s26 = scalar_lea.vmem %s2723_s21, 32 }
0x1517   :  { %p3407_p13 = scmp.ne.s32.totalorder %s2723_s21, %s3406_s7  ;;  %p3411_p0 = scmp.lt.s32.totalorder %s2723_s21, %s2723_s21 }
0x1518   :  { %p3412_p1 = scmp.lt.s32.totalorder %s3410_s26, %s3406_s7 }
0x151a   :  { %p3413_p2 = por %p3412_p1, %p3411_p0 }
0x151c   :  { %p3414_p3 = pnand %p3413_p2, %p3407_p13 }
0x1598   :  { %v2693_v5 = vpop.xlane.xlu0 %2692 }
0x1599   :  { %v2694_v57 = vrot.slane %v2693_v5, 4 }
0x159b   :  { %v2695_v55 = vadd.f32 %v2694_v57, %v2693_v5 }
0x159d   :  { %v2696_v6 = vrot.slane %v2695_v55, 2 }
0x159f   :  { %v2697_v7 = vadd.f32 %v2696_v6, %v2695_v55 }
0x15a1   :  { %v2698_v8 = vrot.slane %v2697_v7, 1 }
0x15a3   :  { %v2699_v9 = vadd.f32 %v2698_v8, %v2697_v7 }
0x15a5   :  { %3292 = vpush %v2699_v9 }
0x15d6   :  { %s3293_s24 = spop %3292 }
0x15d7   :  { %v2701_v10 = vstv %s3293_s24 }
0x15d8   :  { %v2703_v11 = vmul.f32 0.5, %v2701_v10 }
0x15da   :  { %2705 = vst.msk [vmem:[#allocation8] sm:$0x1] %vm2704_vm8, %v2703_v11 }
0x15db   :  { %3417 = shalt.err (!%p3414_p3)
}
0x15dc   :  { %s3418_s14 = scalar_lea.hbm %s4150_s6, 16 }
0x15dd   :  { %p3419_p4 = scmp.ne.s32.totalorder %s4150_s6, %s3418_s14  ;;  %p3422_p5 = scmp.lt.u32.totalorder %s3418_s14, %s4150_s6 }
0x15df   :  { %p3424_p6 = pnand %p3422_p5, %p3419_p4 }
0x15e1   :  { %3427 = shalt.err (!%p3424_p6)
}
0x15e2   :  { %2725 = dma.vmem_to_hbm [thread:$0]  %s2723_s21, 16, %s4150_s6, [#allocation9]  }
0x15e3   :  { %3430 = dma.done.wait [#allocation5], 32  }
0x15e4   :  { %3431 = vsyncadd [#allocation5], 4294967264 }
0x15e5   :  { %3432 = dma.done.wait [#allocation9], 16  }
0x15e6   :  { %3433 = vsyncadd [#allocation9], 4294967280 }
0x15e7   :  { %2732 = vsyncpa [#allocation5], 1 }
0x15e8   :  { %2733 = vsyncpa [#allocation9], 1 }
0x15e9   :  { %2734 = vsyncpa [#allocation6], 1 }

</bundles_post_ra>
